<compile_context>
chip_gen: v7x
topology: tpu7x:2x2x1
jax: 0.10.0
libtpu: 0.0.40
codegen_flags: <defaults>
</compile_context>

<pallas_src>
import functools

import jax
import jax.numpy as jnp
import numpy as np
from jax.experimental import pallas as pl
from jax.experimental.pallas import tpu as pltpu


# -----------------------------------------------------------------------------
# Fused Pallas kernel: all NGCF layers + BPR loss
# -----------------------------------------------------------------------------
def ngcf_fused_kernel(a_ref, e0_ref, w_ref, b_ref, sel_ref,
                      loss_ref,
                      ego_ref, diff_ref, l2_ref,
                      *, reg):
    """Grid axis 0 = layer index (sequential).

    layer l:
        side   = A @ ego                      (single n x n MXU matmul)
        side_L = side - ego                   (L = A - I, second matmul removed)
        pre    = side @ W_gc + (ego * side_L) @ W_bi + (b_gc + b_bi)
        ego'   = leaky_relu(pre)
        norm   = ego' * rsqrt(max(||ego'||^2_row, 1e-24))
    The BPR contributions of each slab of concat([e0, norm_1, ..., norm_L])
    are accumulated incrementally via one (3B, n) x (n, d) gather matmul per
    slab; only the scalar loss is written out.
    """
    l = pl.program_id(0)
    n_layers = pl.num_programs(0)
    d = e0_ref.shape[1]
    batch = sel_ref.shape[0] // 3          # sel = [usel; isel; jsel] stacked

    def accumulate_slab(slab):
        # Stacked one-hot selection matmul == row gather of u/p/n, on the MXU.
        g = jnp.dot(sel_ref[...], slab, preferred_element_type=jnp.float32)
        # sum(u^2) + sum(p^2) + sum(n^2) == sum over all 3B gathered rows.
        l2_ref[...] = l2_ref[...] + 0.5 * jnp.sum(g * g)
        # NOTE: batch is a multiple of 8, so these sublane slices are aligned.
        u_s = g[:batch]
        p_s = g[batch:2 * batch]
        n_s = g[2 * batch:]
        # y_ui - y_uj accumulated directly: u.(p) - u.(n) == u.(p - n)
        diff_ref[...] += jnp.sum(u_s * (p_s - n_s), axis=1, keepdims=True)

    @pl.when(l == 0)
    def _init():
        ego_ref[...] = e0_ref[...]
        diff_ref[...] = jnp.zeros_like(diff_ref)
        l2_ref[...] = jnp.zeros_like(l2_ref)
        accumulate_slab(e0_ref[...])          # slab 0 = initial ego embeddings

    e = ego_ref[...]
    side = jnp.dot(a_ref[...], e, preferred_element_type=jnp.float32)
    side_l = side - e                          # L @ e with L = A - I

    w = w_ref[0]                               # (2d, d) fused [W_gc; W_bi]
    # TODO(synk): a single K=2d MXU push via a minor-dim concat of
    # [side | e*side_l] would use the MXU slightly better; kept as two K=d
    # pushes (shared fused-weight block, single bias add) for guaranteed
    # lowering - the O(n^2 d) A@e matmul dominates the FLOPs anyway.
    pre = (jnp.dot(side, w[:d, :], preferred_element_type=jnp.float32)
           + jnp.dot(e * side_l, w[d:, :], preferred_element_type=jnp.float32)
           + b_ref[0])                         # b = b_gc + b_bi (pre-summed)
    ego_new = jnp.where(pre >= 0, pre, 0.01 * pre)   # F.leaky_relu, slope 0.01
    ego_ref[...] = ego_new

    sumsq = jnp.sum(ego_new * ego_new, axis=1, keepdims=True)
    norm = ego_new * jax.lax.rsqrt(jnp.maximum(sumsq, 1e-24))  # F.normalize p=2
    accumulate_slab(norm)

    @pl.when(l == n_layers - 1)
    def _finalize():
        diff = diff_ref[...]                                     # (B, 1)
        # numerically safe log(sigmoid(x)) = min(x, 0) - log1p(exp(-|x|))
        logsig = jnp.minimum(diff, 0.0) - jnp.log1p(jnp.exp(-jnp.abs(diff)))
        loss = -jnp.sum(logsig, axis=0, keepdims=True) / float(batch)  # (1, 1)
        if reg > 0.0:
            loss = loss + reg * l2_ref[...] / float(batch)
        loss_ref[...] = loss


# -----------------------------------------------------------------------------
# pallas_call wrapper
# -----------------------------------------------------------------------------
def ngcf_forward(adj, user_emb, item_emb, layer_weights, u, i, j, reg, n_users):
    """Full NGCF forward pass (loss_name='bpr') in one fused Pallas kernel."""
    n = adj.shape[0]
    emb_dim = user_emb.shape[1]
    n_layers = len(layer_weights)
    batch = u.shape[0]
    # Sublane-aligned slicing of the stacked gather output (see kernel note).
    assert batch % 8 == 0, "batch size should be a multiple of 8"

    # The stacked-weight path assumes a uniform layer width (true here:
    # emb_dim == layers[k] for all k, as in the reference configuration).
    for (w_gc, _, w_bi, _) in layer_weights:
        assert w_gc.shape == (emb_dim, emb_dim)
        assert w_bi.shape == (emb_dim, emb_dim)

    e0 = jnp.concatenate([user_emb, item_emb], axis=0)            # (n, d)
    w_stack = jnp.stack([jnp.concatenate([w_gc, w_bi], axis=0)
                         for (w_gc, _, w_bi, _) in layer_weights])  # (L, 2d, d)
    b_stack = jnp.stack([b_gc + b_bi
                         for (_, b_gc, _, b_bi) in layer_weights])  # (L, 1, d)

    # Stacked one-hot row selectors: the in-kernel gather of (u, pos, neg)
    # rows becomes a single (3B, n) x (n, d) MXU matmul per slab.
    sel_all = jnp.concatenate([
        jax.nn.one_hot(u, n, dtype=jnp.float32),
        jax.nn.one_hot(i + n_users, n, dtype=jnp.float32),
        jax.nn.one_hot(j + n_users, n, dtype=jnp.float32),
    ], axis=0)                                                     # (3B, n)

    out = pl.pallas_call(
        functools.partial(ngcf_fused_kernel, reg=float(reg)),
        out_shape=jax.ShapeDtypeStruct((1, 1), jnp.float32),
        grid=(n_layers,),
        in_specs=[
            pl.BlockSpec((n, n), lambda l: (0, 0)),                # A (resident)
            pl.BlockSpec((n, emb_dim), lambda l: (0, 0)),          # initial ego
            pl.BlockSpec((1, 2 * emb_dim, emb_dim), lambda l: (l, 0, 0)),  # W_l
            pl.BlockSpec((1, 1, emb_dim), lambda l: (l, 0, 0)),            # b_l
            pl.BlockSpec((3 * batch, n), lambda l: (0, 0)),        # [u;i;j] sel
        ],
        out_specs=pl.BlockSpec((1, 1), lambda l: (0, 0)),          # scalar loss
        scratch_shapes=[
            pltpu.VMEM((n, emb_dim), jnp.float32),   # running ego embedding
            pltpu.VMEM((batch, 1), jnp.float32),     # y_ui - y_uj accumulator
            pltpu.VMEM((1, 1), jnp.float32),         # L2-reg accumulator
        ],
        compiler_params=pltpu.CompilerParams(
            dimension_semantics=("arbitrary",)),     # layers are sequential
    )(adj, e0, w_stack, b_stack, sel_all)
    return out[0, 0]


# -----------------------------------------------------------------------------
# pure-JAX reference (mirrors the original PyTorch module, unfused math)
# -----------------------------------------------------------------------------
def ngcf_reference(a, lmat, user_emb, item_emb, layer_weights, u, i, j,
                   reg, n_users):
    ego = jnp.concatenate([user_emb, item_emb], axis=0)
    all_embs = [ego]
    for (w_gc, b_gc, w_bi, b_bi) in layer_weights:
        side = a @ ego
        side_l = lmat @ ego
        sum_emb = side @ w_gc + b_gc
        bi_emb = (ego * side_l) @ w_bi + b_bi
        ego = jax.nn.leaky_relu(sum_emb + bi_emb, negative_slope=0.01)
        nrm = jnp.maximum(
            jnp.sqrt(jnp.sum(ego * ego, axis=1, keepdims=True)), 1e-12)
        all_embs.append(ego / nrm)
    all_embs = jnp.concatenate(all_embs, axis=1)
    u_e = all_embs[:n_users][u]
    p_e = all_embs[n_users:][i]
    n_e = all_embs[n_users:][j]
    y_ui = jnp.sum(u_e * p_e, axis=1)
    y_uj = jnp.sum(u_e * n_e, axis=1)
    loss = -jnp.mean(jax.nn.log_sigmoid(y_ui - y_uj))
    if reg > 0.0:
        l2 = (jnp.sum(u_e ** 2) / 2.0 + jnp.sum(p_e ** 2) / 2.0 +
              jnp.sum(n_e ** 2) / 2.0) / u_e.shape[0]
        loss = loss + reg * l2
    return loss


# -----------------------------------------------------------------------------
# deterministic setup
# -----------------------------------------------------------------------------
def xavier_uniform(key, shape):
    bound = float(np.sqrt(6.0 / (shape[0] + shape[1])))
    return jax.random.uniform(key, shape, jnp.float32, -bound, bound)


if __name__ == "__main__":
    n_users, n_items = 64, 64
    emb_dim = 32
    layers = [32, 32]
    reg = 1e-4
    batch = 8
    n = n_users + n_items

    root = jax.random.PRNGKey(0)
    keys = jax.random.split(root, 16)

    # deterministic dense "adjacency" (stands in for the scipy sparse adj_mtx)
    r = (jax.random.uniform(keys[0], (n_users, n_items)) < 0.1).astype(jnp.float32)
    a_bip = jnp.block([[jnp.zeros((n_users, n_users)), r],
                       [r.T, jnp.zeros((n_items, n_items))]])
    deg = jnp.sum(a_bip, axis=1)
    d_inv_sqrt = jnp.where(deg > 0, 1.0 / jnp.sqrt(jnp.maximum(deg, 1e-12)), 0.0)
    norm_adj = a_bip * d_inv_sqrt[:, None] * d_inv_sqrt[None, :]
    adj = (norm_adj + jnp.eye(n)).astype(jnp.float32)     # adj_mtx
    lap = (adj - jnp.eye(n)).astype(jnp.float32)          # laplacian = adj - I

    # parameters (xavier-uniform, deterministic)
    user_emb = xavier_uniform(keys[1], (n_users, emb_dim))
    item_emb = xavier_uniform(keys[2], (n_items, emb_dim))
    layer_weights = []
    sizes = [emb_dim] + layers
    kidx = 3
    for k in range(len(layers)):
        w_gc = xavier_uniform(keys[kidx + 0], (sizes[k], sizes[k + 1]))
        b_gc = xavier_uniform(keys[kidx + 1], (1, sizes[k + 1]))
        w_bi = xavier_uniform(keys[kidx + 2], (sizes[k], sizes[k + 1]))
        b_bi = xavier_uniform(keys[kidx + 3], (1, sizes[k + 1]))
        layer_weights.append((w_gc, b_gc, w_bi, b_bi))
        kidx += 4

    # batch of (user, pos item, neg item) indices
    u = jax.random.randint(keys[kidx + 0], (batch,), 0, n_users)
    i = jax.random.randint(keys[kidx + 1], (batch,), 0, n_items)
    j = jax.random.randint(keys[kidx + 2], (batch,), 0, n_items)

    loss = ngcf_forward(adj, user_emb, item_emb, layer_weights,
                        u, i, j, reg, n_users)
    loss = jax.block_until_ready(loss)

    ref = ngcf_reference(adj, lap, user_emb, item_emb, layer_weights,
                         u, i, j, reg, n_users)
    np.testing.assert_allclose(np.asarray(loss), np.asarray(ref),
                               rtol=1e-3, atol=1e-4)
    print("KERNEL_OK")
</pallas_src>

<mosaic_0001>
module attributes {stable_mosaic.version = 11 : i64} {
  func.func @ngcf_fused_kernel(%arg0: i32, %arg1: memref<128x128xf32, #tpu.memory_space<vmem>>, %arg2: memref<128x32xf32, #tpu.memory_space<vmem>>, %arg3: memref<1x64x32xf32, #tpu.memory_space<vmem>>, %arg4: memref<1x1x32xf32, #tpu.memory_space<vmem>>, %arg5: memref<24x128xf32, #tpu.memory_space<vmem>>, %arg6: memref<1x1xf32, #tpu.memory_space<vmem>>, %arg7: memref<128x32xf32, #tpu.memory_space<vmem>>, %arg8: memref<8x1xf32, #tpu.memory_space<vmem>>, %arg9: memref<1x1xf32, #tpu.memory_space<vmem>>) attributes {dimension_semantics = [#tpu.dimension_semantics<arbitrary>], iteration_bounds = array<i64: 2>, scalar_prefetch = 0 : i64, scratch_operands = 3 : i64, tpu.core_type = #tpu.core_type<tc>, window_params = [{pipeline_mode = #tpu.pipeline_mode<synchronous>, transform_indices = @transform_0, window_bounds = array<i64: 128, 128>}, {pipeline_mode = #tpu.pipeline_mode<synchronous>, transform_indices = @transform_1, window_bounds = array<i64: 128, 32>}, {transform_indices = @transform_2, window_bounds = array<i64: 1, 64, 32>}, {transform_indices = @transform_3, window_bounds = array<i64: 1, 1, 32>}, {pipeline_mode = #tpu.pipeline_mode<synchronous>, transform_indices = @transform_4, window_bounds = array<i64: 24, 128>}, {pipeline_mode = #tpu.pipeline_mode<synchronous>, transform_indices = @transform_5, window_bounds = array<i64: 1, 1>}]} {
    %c0_i32 = arith.constant 0 : i32
    %0 = arith.cmpi eq, %arg0, %c0_i32 : i32
    %1 = arith.extui %0 : i1 to i32
    %c0_i32_0 = arith.constant 0 : i32
    %2 = arith.cmpi ne, %1, %c0_i32_0 : i32
    scf.if %2 {
      %c0_33 = arith.constant 0 : index
      %c0_34 = arith.constant 0 : index
      %58 = vector.load %arg2[%c0_33, %c0_34] : memref<128x32xf32, #tpu.memory_space<vmem>>, vector<128x32xf32>
      %c0_35 = arith.constant 0 : index
      %c0_36 = arith.constant 0 : index
      %59 = vector.load %arg7[%c0_35, %c0_36] : memref<128x32xf32, #tpu.memory_space<vmem>>, vector<128x32xf32>
      tpu.vector_store %arg7[%c0_35, %c0_36], %58 {strides = array<i32>} : memref<128x32xf32, #tpu.memory_space<vmem>>, vector<128x32xf32>,
      %cst_37 = arith.constant 0.000000e+00 : f32
      %60 = vector.broadcast %cst_37 : f32 to vector<8x1xf32>
      %c0_38 = arith.constant 0 : index
      %c0_39 = arith.constant 0 : index
      %61 = vector.load %arg8[%c0_38, %c0_39] : memref<8x1xf32, #tpu.memory_space<vmem>>, vector<8x1xf32>
      tpu.vector_store %arg8[%c0_38, %c0_39], %60 {strides = array<i32>} : memref<8x1xf32, #tpu.memory_space<vmem>>, vector<8x1xf32>,
      %cst_40 = arith.constant 0.000000e+00 : f32
      %62 = vector.broadcast %cst_40 : f32 to vector<1x1xf32>
      %c0_41 = arith.constant 0 : index
      %c0_42 = arith.constant 0 : index
      %63 = vector.load %arg9[%c0_41, %c0_42] : memref<1x1xf32, #tpu.memory_space<vmem>>, vector<1x1xf32>
      tpu.vector_store %arg9[%c0_41, %c0_42], %62 {strides = array<i32>} : memref<1x1xf32, #tpu.memory_space<vmem>>, vector<1x1xf32>,
      %c0_43 = arith.constant 0 : index
      %c0_44 = arith.constant 0 : index
      %64 = vector.load %arg2[%c0_43, %c0_44] : memref<128x32xf32, #tpu.memory_space<vmem>>, vector<128x32xf32>
      %c0_45 = arith.constant 0 : index
      %c0_46 = arith.constant 0 : index
      %65 = vector.load %arg5[%c0_45, %c0_46] : memref<24x128xf32, #tpu.memory_space<vmem>>, vector<24x128xf32>
      %cst_47 = arith.constant dense<0.000000e+00> : vector<24x32xf32>
      %66 = tpu.matmul %65, %64, %cst_47 {dimension_numbers = #tpu.dot_dimension_numbers<[1], [0], [0], [1], [0, 0, 1, 1], [], []>} : vector<24x128xf32>, vector<128x32xf32>, vector<24x32xf32> -> vector<24x32xf32>
      %c0_48 = arith.constant 0 : index
      %c0_49 = arith.constant 0 : index
      %67 = vector.load %arg9[%c0_48, %c0_49] : memref<1x1xf32, #tpu.memory_space<vmem>>, vector<1x1xf32>
      %68 = arith.mulf %66, %66 : vector<24x32xf32>
      %69 = vector.shape_cast %68 : vector<24x32xf32> to vector<1x24x32xf32>
      %cst_50 = arith.constant dense<0.000000e+00> : vector<1xf32>
      %70 = vector.multi_reduction <add>, %69, %cst_50 [1, 2] : vector<1x24x32xf32> to vector<1xf32>
      %71 = vector.shape_cast %70 : vector<1xf32> to vector<1x1x1xf32>
      %72 = vector.extract %71[0, 0, 0] : f32 from vector<1x1x1xf32>
      %cst_51 = arith.constant 5.000000e-01 : f32
      %73 = arith.mulf %cst_51, %72 : f32
      %74 = vector.broadcast %73 : f32 to vector<1x1xf32>
      %75 = arith.addf %67, %74 : vector<1x1xf32>
      %c0_52 = arith.constant 0 : index
      %c0_53 = arith.constant 0 : index
      %76 = vector.load %arg9[%c0_52, %c0_53] : memref<1x1xf32, #tpu.memory_space<vmem>>, vector<1x1xf32>
      tpu.vector_store %arg9[%c0_52, %c0_53], %75 {strides = array<i32>} : memref<1x1xf32, #tpu.memory_space<vmem>>, vector<1x1xf32>,
      %77 = vector.extract_strided_slice %66 {offsets = [0, 0], sizes = [8, 32], strides = [1, 1]} : vector<24x32xf32> to vector<8x32xf32>
      %78 = vector.extract_strided_slice %66 {offsets = [8, 0], sizes = [8, 32], strides = [1, 1]} : vector<24x32xf32> to vector<8x32xf32>
      %79 = vector.extract_strided_slice %66 {offsets = [16, 0], sizes = [8, 32], strides = [1, 1]} : vector<24x32xf32> to vector<8x32xf32>
      %c0_54 = arith.constant 0 : index
      %c0_55 = arith.constant 0 : index
      %80 = vector.load %arg8[%c0_54, %c0_55] : memref<8x1xf32, #tpu.memory_space<vmem>>, vector<8x1xf32>
      %81 = arith.subf %78, %79 : vector<8x32xf32>
      %82 = arith.mulf %77, %81 : vector<8x32xf32>
      %cst_56 = arith.constant dense<0.000000e+00> : vector<8xf32>
      %83 = vector.multi_reduction <add>, %82, %cst_56 [1] : vector<8x32xf32> to vector<8xf32>
      %84 = vector.shape_cast %83 : vector<8xf32> to vector<8x1xf32>
      %85 = arith.addf %80, %84 : vector<8x1xf32>
      %c0_57 = arith.constant 0 : index
      %c0_58 = arith.constant 0 : index
      %86 = vector.load %arg8[%c0_57, %c0_58] : memref<8x1xf32, #tpu.memory_space<vmem>>, vector<8x1xf32>
      tpu.vector_store %arg8[%c0_57, %c0_58], %85 {strides = array<i32>} : memref<8x1xf32, #tpu.memory_space<vmem>>, vector<8x1xf32>,
    } else {
    }
    %c0 = arith.constant 0 : index
    %c0_1 = arith.constant 0 : index
    %3 = vector.load %arg7[%c0, %c0_1] : memref<128x32xf32, #tpu.memory_space<vmem>>, vector<128x32xf32>
    %c0_2 = arith.constant 0 : index
    %c0_3 = arith.constant 0 : index
    %4 = vector.load %arg1[%c0_2, %c0_3] : memref<128x128xf32, #tpu.memory_space<vmem>>, vector<128x128xf32>
    %cst = arith.constant dense<0.000000e+00> : vector<128x32xf32>
    %5 = tpu.matmul %4, %3, %cst {dimension_numbers = #tpu.dot_dimension_numbers<[1], [0], [0], [1], [0, 0, 1, 1], [], []>} : vector<128x128xf32>, vector<128x32xf32>, vector<128x32xf32> -> vector<128x32xf32>
    %6 = arith.subf %5, %3 : vector<128x32xf32>
    %c0_4 = arith.constant 0 : index
    %c0_5 = arith.constant 0 : index
    %c0_6 = arith.constant 0 : index
    %7 = vector.load %arg3[%c0_4, %c0_5, %c0_6] : memref<1x64x32xf32, #tpu.memory_space<vmem>>, vector<1x64x32xf32>
    %8 = vector.shape_cast %7 : vector<1x64x32xf32> to vector<64x32xf32>
    %9 = vector.extract_strided_slice %8 {offsets = [0, 0], sizes = [32, 32], strides = [1, 1]} : vector<64x32xf32> to vector<32x32xf32>
    %cst_7 = arith.constant dense<0.000000e+00> : vector<128x32xf32>
    %10 = tpu.matmul %5, %9, %cst_7 {dimension_numbers = #tpu.dot_dimension_numbers<[1], [0], [0], [1], [0, 0, 1, 1], [], []>} : vector<128x32xf32>, vector<32x32xf32>, vector<128x32xf32> -> vector<128x32xf32>
    %11 = arith.mulf %3, %6 : vector<128x32xf32>
    %12 = vector.extract_strided_slice %8 {offsets = [32, 0], sizes = [32, 32], strides = [1, 1]} : vector<64x32xf32> to vector<32x32xf32>
    %cst_8 = arith.constant dense<0.000000e+00> : vector<128x32xf32>
    %13 = tpu.matmul %11, %12, %cst_8 {dimension_numbers = #tpu.dot_dimension_numbers<[1], [0], [0], [1], [0, 0, 1, 1], [], []>} : vector<128x32xf32>, vector<32x32xf32>, vector<128x32xf32> -> vector<128x32xf32>
    %14 = arith.addf %10, %13 : vector<128x32xf32>
    %c0_9 = arith.constant 0 : index
    %c0_10 = arith.constant 0 : index
    %c0_11 = arith.constant 0 : index
    %15 = vector.load %arg4[%c0_9, %c0_10, %c0_11] : memref<1x1x32xf32, #tpu.memory_space<vmem>>, vector<1x1x32xf32>
    %16 = vector.shape_cast %15 : vector<1x1x32xf32> to vector<1x32xf32>
    %17 = vector.broadcast %16 : vector<1x32xf32> to vector<128x32xf32>
    %18 = arith.addf %14, %17 : vector<128x32xf32>
    %cst_12 = arith.constant 0.000000e+00 : f32
    %19 = vector.broadcast %cst_12 : f32 to vector<128x32xf32>
    %20 = arith.cmpf oge, %18, %19 : vector<128x32xf32>
    %cst_13 = arith.constant 0.00999999977 : f32
    %21 = vector.broadcast %cst_13 : f32 to vector<128x32xf32>
    %22 = arith.mulf %21, %18 : vector<128x32xf32>
    %23 = arith.select %20, %18, %22 : vector<128x32xi1>, vector<128x32xf32>
    %c0_14 = arith.constant 0 : index
    %c0_15 = arith.constant 0 : index
    %24 = vector.load %arg7[%c0_14, %c0_15] : memref<128x32xf32, #tpu.memory_space<vmem>>, vector<128x32xf32>
    tpu.vector_store %arg7[%c0_14, %c0_15], %23 {strides = array<i32>} : memref<128x32xf32, #tpu.memory_space<vmem>>, vector<128x32xf32>,
    %25 = arith.mulf %23, %23 : vector<128x32xf32>
    %cst_16 = arith.constant dense<0.000000e+00> : vector<128xf32>
    %26 = vector.multi_reduction <add>, %25, %cst_16 [1] : vector<128x32xf32> to vector<128xf32>
    %27 = vector.shape_cast %26 : vector<128xf32> to vector<128x1xf32>
    %cst_17 = arith.constant 1.000000e-24 : f32
    %28 = vector.broadcast %cst_17 : f32 to vector<128x1xf32>
    %29 = arith.maximumf %27, %28 : vector<128x1xf32>
    %30 = math.rsqrt %29 : vector<128x1xf32>
    %31 = vector.broadcast %30 : vector<128x1xf32> to vector<128x32xf32>
    %32 = arith.mulf %23, %31 : vector<128x32xf32>
    %c0_18 = arith.constant 0 : index
    %c0_19 = arith.constant 0 : index
    %33 = vector.load %arg5[%c0_18, %c0_19] : memref<24x128xf32, #tpu.memory_space<vmem>>, vector<24x128xf32>
    %cst_20 = arith.constant dense<0.000000e+00> : vector<24x32xf32>
    %34 = tpu.matmul %33, %32, %cst_20 {dimension_numbers = #tpu.dot_dimension_numbers<[1], [0], [0], [1], [0, 0, 1, 1], [], []>} : vector<24x128xf32>, vector<128x32xf32>, vector<24x32xf32> -> vector<24x32xf32>
    %c0_21 = arith.constant 0 : index
    %c0_22 = arith.constant 0 : index
    %35 = vector.load %arg9[%c0_21, %c0_22] : memref<1x1xf32, #tpu.memory_space<vmem>>, vector<1x1xf32>
    %36 = arith.mulf %34, %34 : vector<24x32xf32>
    %37 = vector.shape_cast %36 : vector<24x32xf32> to vector<1x24x32xf32>
    %cst_23 = arith.constant dense<0.000000e+00> : vector<1xf32>
    %38 = vector.multi_reduction <add>, %37, %cst_23 [1, 2] : vector<1x24x32xf32> to vector<1xf32>
    %39 = vector.shape_cast %38 : vector<1xf32> to vector<1x1x1xf32>
    %40 = vector.extract %39[0, 0, 0] : f32 from vector<1x1x1xf32>
    %cst_24 = arith.constant 5.000000e-01 : f32
    %41 = arith.mulf %cst_24, %40 : f32
    %42 = vector.broadcast %41 : f32 to vector<1x1xf32>
    %43 = arith.addf %35, %42 : vector<1x1xf32>
    %c0_25 = arith.constant 0 : index
    %c0_26 = arith.constant 0 : index
    %44 = vector.load %arg9[%c0_25, %c0_26] : memref<1x1xf32, #tpu.memory_space<vmem>>, vector<1x1xf32>
    tpu.vector_store %arg9[%c0_25, %c0_26], %43 {strides = array<i32>} : memref<1x1xf32, #tpu.memory_space<vmem>>, vector<1x1xf32>,
    %45 = vector.extract_strided_slice %34 {offsets = [0, 0], sizes = [8, 32], strides = [1, 1]} : vector<24x32xf32> to vector<8x32xf32>
    %46 = vector.extract_strided_slice %34 {offsets = [8, 0], sizes = [8, 32], strides = [1, 1]} : vector<24x32xf32> to vector<8x32xf32>
    %47 = vector.extract_strided_slice %34 {offsets = [16, 0], sizes = [8, 32], strides = [1, 1]} : vector<24x32xf32> to vector<8x32xf32>
    %c0_27 = arith.constant 0 : index
    %c0_28 = arith.constant 0 : index
    %48 = vector.load %arg8[%c0_27, %c0_28] : memref<8x1xf32, #tpu.memory_space<vmem>>, vector<8x1xf32>
    %49 = arith.subf %46, %47 : vector<8x32xf32>
    %50 = arith.mulf %45, %49 : vector<8x32xf32>
    %cst_29 = arith.constant dense<0.000000e+00> : vector<8xf32>
    %51 = vector.multi_reduction <add>, %50, %cst_29 [1] : vector<8x32xf32> to vector<8xf32>
    %52 = vector.shape_cast %51 : vector<8xf32> to vector<8x1xf32>
    %53 = arith.addf %48, %52 : vector<8x1xf32>
    %c0_30 = arith.constant 0 : index
    %c0_31 = arith.constant 0 : index
    %54 = vector.load %arg8[%c0_30, %c0_31] : memref<8x1xf32, #tpu.memory_space<vmem>>, vector<8x1xf32>
    tpu.vector_store %arg8[%c0_30, %c0_31], %53 {strides = array<i32>} : memref<8x1xf32, #tpu.memory_space<vmem>>, vector<8x1xf32>,
    %c1_i32 = arith.constant 1 : i32
    %55 = arith.cmpi eq, %arg0, %c1_i32 : i32
    %56 = arith.extui %55 : i1 to i32
    %c0_i32_32 = arith.constant 0 : i32
    %57 = arith.cmpi ne, %56, %c0_i32_32 : i32
    scf.if %57 {
      %c0_33 = arith.constant 0 : index
      %c0_34 = arith.constant 0 : index
      %58 = vector.load %arg8[%c0_33, %c0_34] : memref<8x1xf32, #tpu.memory_space<vmem>>, vector<8x1xf32>
      %cst_35 = arith.constant 0.000000e+00 : f32
      %59 = vector.broadcast %cst_35 : f32 to vector<8x1xf32>
      %60 = arith.minimumf %58, %59 : vector<8x1xf32>
      %61 = math.absf %58 : vector<8x1xf32>
      %cst_36 = arith.constant 0.000000e+00 : f32
      %62 = vector.broadcast %cst_36 : f32 to vector<8x1xf32>
      %63 = arith.subf %62, %61 : vector<8x1xf32>
      %64 = math.exp %63 : vector<8x1xf32>
      %65 = math.log1p %64 : vector<8x1xf32>
      %66 = arith.subf %60, %65 : vector<8x1xf32>
      %cst_37 = arith.constant dense<0.000000e+00> : vector<1xf32>
      %67 = vector.multi_reduction <add>, %66, %cst_37 [0] : vector<8x1xf32> to vector<1xf32>
      %68 = vector.shape_cast %67 : vector<1xf32> to vector<1x1xf32>
      %cst_38 = arith.constant 0.000000e+00 : f32
      %69 = vector.broadcast %cst_38 : f32 to vector<1x1xf32>
      %70 = arith.subf %69, %68 : vector<1x1xf32>
      %cst_39 = arith.constant 8.000000e+00 : f32
      %71 = vector.broadcast %cst_39 : f32 to vector<1x1xf32>
      %72 = arith.divf %70, %71 : vector<1x1xf32>
      %c0_40 = arith.constant 0 : index
      %c0_41 = arith.constant 0 : index
      %73 = vector.load %arg9[%c0_40, %c0_41] : memref<1x1xf32, #tpu.memory_space<vmem>>, vector<1x1xf32>
      %cst_42 = arith.constant 9.99999974E-5 : f32
      %74 = vector.broadcast %cst_42 : f32 to vector<1x1xf32>
      %75 = arith.mulf %74, %73 : vector<1x1xf32>
      %cst_43 = arith.constant 8.000000e+00 : f32
      %76 = vector.broadcast %cst_43 : f32 to vector<1x1xf32>
      %77 = arith.divf %75, %76 : vector<1x1xf32>
      %78 = arith.addf %72, %77 : vector<1x1xf32>
      %c0_44 = arith.constant 0 : index
      %c0_45 = arith.constant 0 : index
      %79 = vector.load %arg6[%c0_44, %c0_45] : memref<1x1xf32, #tpu.memory_space<vmem>>, vector<1x1xf32>
      tpu.vector_store %arg6[%c0_44, %c0_45], %78 {strides = array<i32>} : memref<1x1xf32, #tpu.memory_space<vmem>>, vector<1x1xf32>,
    } else {
    }
    return
  }
  func.func @transform_0(%arg0: i32) -> (i32, i32) {
    %c0_i32 = arith.constant 0 : i32
    %c0_i32_0 = arith.constant 0 : i32
    %c0_i32_1 = arith.constant 0 : i32
    return %c0_i32, %c0_i32_0 : i32, i32
  }
  func.func @transform_1(%arg0: i32) -> (i32, i32) {
    %c0_i32 = arith.constant 0 : i32
    %c0_i32_0 = arith.constant 0 : i32
    %c0_i32_1 = arith.constant 0 : i32
    return %c0_i32, %c0_i32_0 : i32, i32
  }
  func.func @transform_2(%arg0: i32) -> (i32, i32, i32) {
    %c0_i32 = arith.constant 0 : i32
    %c0_i32_0 = arith.constant 0 : i32
    %c0_i32_1 = arith.constant 0 : i32
    return %arg0, %c0_i32, %c0_i32_0 : i32, i32, i32
  }
  func.func @transform_3(%arg0: i32) -> (i32, i32, i32) {
    %c0_i32 = arith.constant 0 : i32
    %c0_i32_0 = arith.constant 0 : i32
    %c0_i32_1 = arith.constant 0 : i32
    return %arg0, %c0_i32, %c0_i32_0 : i32, i32, i32
  }
  func.func @transform_4(%arg0: i32) -> (i32, i32) {
    %c0_i32 = arith.constant 0 : i32
    %c0_i32_0 = arith.constant 0 : i32
    %c0_i32_1 = arith.constant 0 : i32
    return %c0_i32, %c0_i32_0 : i32, i32
  }
  func.func @transform_5(%arg0: i32) -> (i32, i32) {
    %c0_i32 = arith.constant 0 : i32
    %c0_i32_0 = arith.constant 0 : i32
    %c0_i32_1 = arith.constant 0 : i32
    return %c0_i32, %c0_i32_0 : i32, i32
  }
}

</mosaic_0001>

<bundles_post_ra>
// kernel: tpu_custom_call.1
= control target key start
LH: loop header
LB: loop body
LE: loop exit
PB: predicated region body
PF: predicated region fallthrough
CT: control target
= control target key end

     0   :  { %10 = vsyncpa [#allocation6], 0  ;;  %s2025_s18 = smov 0   ;;  %s2542_s0 = inlined_call_operand.vmem [shape: f32[128,128], index: 0, kind: input, shape index: {}]   ;;  %s2543_s1 = inlined_call_operand.vmem [shape: f32[128,32], index: 1, kind: input, shape index: {}]   ;;  %s2544_s2 = inlined_call_operand.vmem [shape: f32[2,64,32], index: 2, kind: input, shape index: {}]   ;;  %s2545_s3 = inlined_call_operand.vmem [shape: f32[2,1,32], index: 3, kind: input, shape index: {}]   ;;  %s2546_s4 = inlined_call_operand.vmem [shape: f32[24,128], index: 4, kind: input, shape index: {}]   ;;  %s2547_s5 = inlined_call_operand.hbm [shape: f32[1,1], index: 5, kind: output, shape index: {}]  }
   0x1 LB: > { %s2031_s19 = sadd.s32 4294967295, %s1986_s18   ;;  %p1406_p0 = scmp.ge.s32.totalorder %s1986_s18, 1  ;;  %s1986_s18 = sphi %s2025_s18, %s16_s18  }
   0x2   : > { %p191_p1 = scmp.lt.s32.totalorder %s1986_s18, 3 }
   0x4   : > { %p192_p2 = pnand %p1406_p0, %p191_p1 }
   0x5   : > { %p217_p3 = scmp.lt.s32.totalorder (!%p192_p2), %s2031_s19, 1  ;;  %p1409_p4 = scmp.ne.s32.totalorder (!%p192_p2), %s2031_s19, 0 }
   0x6   : > { %195 = sbr.rel (%p192_p2) target bundleno = 1656 (0x678), region = 40 }
   0xd   : > { %s2037_s20 = scalar_select %p217_p3, %s2031_s19, 1 }
   0xe   : > { %228 = sbr.rel (%p1409_p4) target bundleno = 479 (0x1df), region = 44  ;;  %v2053_v0 = vld [vmem:[%s2543_s1] sm:$0xff] (!%p1409_p4)  ;;  %v2058_v1 = vld [vmem:[%s2543_s1 + $0x8] sm:$0xff] (!%p1409_p4)  ;;  %v2063_v2 = vld [vmem:[%s2543_s1 + $0x10] sm:$0xff] (!%p1409_p4)  ;;  %v1988_v3 = vmov (!%p1409_p4), 0.0|0.0   ;;  %vm1989_vm0 = vmmov (!%p1409_p4), 0  }
   0xf   : > { %s1448_s21 = sshll.u32 %s2037_s20, 6  ;;  %s224_s24 = scalar_lea.vmem %s2545_s3, %s2037_s20  ;;  %1761 = vmatprep.subr.bf16.mxu0 (!%p1409_p4), %v1988_v3  ;;  %1857 = vmatprep.subr.bf16.mxu1 (!%p1409_p4), %v1988_v3  ;;  %v1762_v4 = vpack.c.bf16 (!%p1409_p4), %v2058_v1, %v2053_v0  ;;  %v2070_v5 = vld [vmem:[%s2543_s1 + $0x18] sm:$0xff] (!%p1409_p4)  ;;  %v1990_v6 = vmov (!%p1409_p4), 0.0   ;;  %v270_v8 = vld [vmem:[%s2543_s1 + $0x20] sm:$0xff] (!%p1409_p4)  ;;  %v271_v9 = vld [vmem:[%s2543_s1 + $0x28] sm:$0xff] (!%p1409_p4)  ;;  %vm245_vm1 = vcmask (!%p1409_p4), 261120  }
  0x10   : > { %s2047_s27 = scalar_lea.vmem %s2544_s2, %s1448_s21  ;;  %1591 = vmatprep.mubr.msk.f32.mxu0 (!%p1409_p4), %vm1989_vm0, %v1990_v6  ;;  %1594 = vmatprep.mubr.msk.f32.mxu1 (!%p1409_p4), %vm1989_vm0, %v1990_v6  ;;  %v1765_v7 = vpack.c.bf16 (!%p1409_p4), %v2070_v5, %v2063_v2  ;;  %v1768_v10 = vpack.c.bf16 (!%p1409_p4), %v271_v9, %v270_v8  ;;  %v272_v11 = vld [vmem:[%s2543_s1 + $0x30] sm:$0xff] (!%p1409_p4)  ;;  %v273_v12 = vld [vmem:[%s2543_s1 + $0x38] sm:$0xff] (!%p1409_p4)  ;;  %v274_v14 = vld [vmem:[%s2543_s1 + $0x40] sm:$0xff] (!%p1409_p4)  ;;  %246 = vst.msk [vmem:[#allocation2] sm:$0xff] (!%p1409_p4), %vm245_vm1, %v2053_v0  ;;  %vm262_vm2 = vcmask (!%p1409_p4), 7168   ;;  %vm264_vm3 = vcmask (!%p1409_p4), 0  }
  0x11   : > { %1763 = vmatpush3.bf16.msra.mxu0 (!%p1409_p4), %v1762_v4  ;;  %1865 = vmatpush3.bf16.msra.mxu1 (!%p1409_p4), %v1762_v4  ;;  %v1771_v13 = vpack.c.bf16 (!%p1409_p4), %v273_v12, %v272_v11  ;;  %v275_v15 = vld [vmem:[%s2543_s1 + $0x48] sm:$0xff] (!%p1409_p4)  ;;  %v276_v17 = vld [vmem:[%s2543_s1 + $0x50] sm:$0xff] (!%p1409_p4)  ;;  %v277_v18 = vld [vmem:[%s2543_s1 + $0x58] sm:$0xff] (!%p1409_p4)  ;;  %247 = vst.msk [vmem:[#allocation2 + $0x8] sm:$0xff] (!%p1409_p4), %vm245_vm1, %v2058_v1 }
  0x12   : > { %1764 = vmatprep.subr.bf16.mxu0 (!%p1409_p4), %v1988_v3  ;;  %1858 = vmatprep.subr.bf16.mxu1 (!%p1409_p4), %v1988_v3  ;;  %v1774_v16 = vpack.c.bf16 (!%p1409_p4), %v275_v15, %v274_v14  ;;  %v1777_v19 = vpack.c.bf16 (!%p1409_p4), %v277_v18, %v276_v17  ;;  %v278_v20 = vld [vmem:[%s2543_s1 + $0x60] sm:$0xff] (!%p1409_p4)  ;;  %v279_v21 = vld [vmem:[%s2543_s1 + $0x68] sm:$0xff] (!%p1409_p4)  ;;  %v280_v23 = vld [vmem:[%s2543_s1 + $0x70] sm:$0xff] (!%p1409_p4)  ;;  %248 = vst.msk [vmem:[#allocation2 + $0x10] sm:$0xff] (!%p1409_p4), %vm245_vm1, %v2063_v2 }
  0x13   : > { %v1780_v22 = vpack.c.bf16 (!%p1409_p4), %v279_v21, %v278_v20  ;;  %v281_v24 = vld [vmem:[%s2543_s1 + $0x78] sm:$0xff] (!%p1409_p4)  ;;  %v282_v26 = vld [vmem:[%s2546_s4] sm:$0xff] (!%p1409_p4)  ;;  %v283_v27 = vld [vmem:[%s2546_s4 + $0x8] sm:$0xff] (!%p1409_p4)  ;;  %249 = vst.msk [vmem:[#allocation2 + $0x18] sm:$0xff] (!%p1409_p4), %vm245_vm1, %v2070_v5 }
  0x14   : > { %v1783_v25 = vpack.c.bf16 (!%p1409_p4), %v281_v24, %v280_v23  ;;  %v284_v28 = vld [vmem:[%s2546_s4 + $0x10] sm:$0xff] (!%p1409_p4)  ;;  %250 = vst.msk [vmem:[#allocation2 + $0x20] sm:$0xff] (!%p1409_p4), %vm245_vm1, %v270_v8  ;;  %251 = vst.msk [vmem:[#allocation2 + $0x28] sm:$0xff] (!%p1409_p4), %vm245_vm1, %v271_v9 }
  0x15   : > { %1766 = vmatpush3.bf16.msra.mxu0 %v1765_v7  ;;  %1866 = vmatpush3.bf16.msra.mxu1 %v1765_v7  ;;  %252 = vst.msk [vmem:[#allocation2 + $0x30] sm:$0xff] %vm245_vm1, %v272_v11  ;;  %253 = vst.msk [vmem:[#allocation2 + $0x38] sm:$0xff] %vm245_vm1, %v273_v12 }
  0x16   : > { %1767 = vmatprep.subr.bf16.mxu0 %v1988_v3  ;;  %1859 = vmatprep.subr.bf16.mxu1 %v1988_v3  ;;  %254 = vst.msk [vmem:[#allocation2 + $0x40] sm:$0xff] %vm245_vm1, %v274_v14  ;;  %255 = vst.msk [vmem:[#allocation2 + $0x48] sm:$0xff] %vm245_vm1, %v275_v15 }
  0x17   : > { %256 = vst.msk [vmem:[#allocation2 + $0x50] sm:$0xff] %vm245_vm1, %v276_v17  ;;  %257 = vst.msk [vmem:[#allocation2 + $0x58] sm:$0xff] %vm245_vm1, %v277_v18 }
  0x18   : > { %258 = vst.msk [vmem:[#allocation2 + $0x60] sm:$0xff] %vm245_vm1, %v278_v20  ;;  %259 = vst.msk [vmem:[#allocation2 + $0x68] sm:$0xff] %vm245_vm1, %v279_v21 }
  0x19   : > { %1769 = vmatpush3.bf16.msra.mxu0 %v1768_v10  ;;  %1867 = vmatpush3.bf16.msra.mxu1 %v1768_v10  ;;  %260 = vst.msk [vmem:[#allocation2 + $0x70] sm:$0xff] %vm245_vm1, %v280_v23  ;;  %261 = vst.msk [vmem:[#allocation2 + $0x78] sm:$0xff] %vm245_vm1, %v281_v24 }
  0x1a   : > { %1770 = vmatprep.subr.bf16.mxu0 %v1988_v3  ;;  %1860 = vmatprep.subr.bf16.mxu1 %v1988_v3  ;;  %263 = vst.msk [vmem:[#allocation3] sm:$0xff] %vm262_vm2, %v1990_v6 }
  0x1b   : > { %265 = vst.msk [vmem:[#allocation4] sm:$0x1] %vm264_vm3, %v1990_v6 }
  0x1d   : > { %1772 = vmatpush3.bf16.msra.mxu0 %v1771_v13  ;;  %1868 = vmatpush3.bf16.msra.mxu1 %v1771_v13 }
  0x1e   : > { %1773 = vmatprep.subr.bf16.mxu0 %v1988_v3  ;;  %1861 = vmatprep.subr.bf16.mxu1 %v1988_v3 }
  0x21   : > { %1775 = vmatpush3.bf16.msra.mxu0 %v1774_v16  ;;  %1869 = vmatpush3.bf16.msra.mxu1 %v1774_v16  ;;  %v387_v48 = vld [vmem:[#allocation3] sm:$0xff] }
  0x22   : > { %1776 = vmatprep.subr.bf16.mxu0 %v1988_v3  ;;  %1862 = vmatprep.subr.bf16.mxu1 %v1988_v3  ;;  %v365_v56 = vld [vmem:[#allocation4] sm:$0x1] }
  0x25   : > { %1778 = vmatpush3.bf16.msra.mxu0 %v1777_v19  ;;  %1870 = vmatpush3.bf16.msra.mxu1 %v1777_v19 }
  0x26   : > { %1779 = vmatprep.subr.bf16.mxu0 %v1988_v3  ;;  %1863 = vmatprep.subr.bf16.mxu1 %v1988_v3 }
  0x29   : > { %1781 = vmatpush3.bf16.msra.mxu0 %v1780_v22  ;;  %1871 = vmatpush3.bf16.msra.mxu1 %v1780_v22 }
  0x2a   : > { %1782 = vmatprep.subr.bf16.mxu0 %v1988_v3  ;;  %1864 = vmatprep.subr.bf16.mxu1 %v1988_v3 }
  0x2d   : > { %1784 = vmatpush3.bf16.msra.mxu0 %v1783_v25  ;;  %1872 = vmatpush3.bf16.msra.mxu1 %v1783_v25 }
  0x30   : > { %1592 = vmatmul.mubr.f32.vlgmr.msra.gmra.mrb[0].mxu0 %v282_v26  ;;  %1595 = vmatmul.mubr.f32.vlgmr.msra.gmra.mrb[0].mxu1 %v283_v27 }
  0x31   : > { %1597 = vmatprep.mubr.msk.f32.mxu1 %vm1989_vm0, %v1990_v6 }
  0x34   : > { %1598 = vmatmul.mubr.f32.gmra.mrb[2].mxu1 %v284_v28 }
 0x103   : > { %v351_v29 = vpop.f32.mrb[0].mxu0  ;;  %v356_v30 = vpop.f32.mrb[0].mxu1 }
 0x104   : > { %v366_v31 = vmul.f32 %v351_v29, %v351_v29  ;;  %v367_v32 = vmul.f32 %v356_v30, %v356_v30  ;;  %v1596_v33 = vpop.f32.mrb[1].mxu1  ;;  %v1593_v34 = vpop.f32.mrb[1].mxu0 }
 0x106   : > { %v369_v35 = vsel %vm245_vm1, %v366_v31, 0.0  ;;  %v370_v36 = vsel %vm245_vm1, %v367_v32, 0.0 }
 0x107   : > { %v361_v37 = vpop.f32.mrb[2].mxu1  ;;  %v371_v38 = vadd.f32 %v370_v36, %v369_v35 }
 0x108   : > { %v368_v39 = vmul.f32 %v361_v37, %v361_v37  ;;  %v388_v40 = vsub.f32 %v356_v30, %v361_v37  ;;  %v1599_v41 = vpop.f32.mrb[3].mxu1 }
 0x10a   : > { %v372_v42 = vsel %vm245_vm1, %v368_v39, 0.0  ;;  %v389_v43 = vmul.f32 %v388_v40, %v351_v29 }
 0x10b   : > { %v373_v44 = vadd.f32 %v372_v42, %v371_v38 }
 0x10c   : > { %v390_v45 = vsel %vm245_vm1, %v389_v43, 0.0 }
 0x10d   : > { %374 = vadd.xlane.f32.xlu0 %v373_v44 }
 0x111   : > { %391 = vadd.xlane.f32.xlu0 %v390_v45 }
 0x19a   : > { %v375_v46 = vpop.xlane.xlu0 %374 }
 0x19b   : > { %v376_v47 = vrot.slane %v375_v46, 4 }
 0x19d   : > { %v377_v49 = vadd.f32 %v376_v47, %v375_v46 }
 0x19e   : > { %v392_v50 = vpop.xlane.xlu0 %391 }
 0x19f   : > { %v378_v51 = vrot.slane %v377_v49, 2  ;;  %v393_v52 = vadd.f32 %v392_v50, %v387_v48 }
 0x1a1   : > { %394 = vst.msk [vmem:[#allocation3] sm:$0xff] %vm262_vm2, %v393_v52  ;;  %v379_v53 = vadd.f32 %v378_v51, %v377_v49 }
 0x1a3   : > { %v380_v54 = vrot.slane %v379_v53, 1 }
 0x1a5   : > { %v381_v55 = vadd.f32 %v380_v54, %v379_v53 }
 0x1a7   : > { %1889 = vpush %v381_v55 }
 0x1d8   : > { %s1890_s25 = spop %1889 }
 0x1d9   : > { %s383_s26 = smul.f32 0.5, %s1890_s25 }
 0x1db   : > { %v384_v57 = vstv %s383_s26 }
 0x1dc   : > { %v385_v58 = vadd.f32 %v384_v57, %v365_v56 }
 0x1de   : > { %386 = vst.msk [vmem:[#allocation4] sm:$0x1] %vm264_vm3, %v385_v58 }
 0x1df PF: > { %v411_v4 = vld [vmem:[%s2542_s0] sm:$0xff]  ;;  %v2182_v9 = vld [vmem:[#allocation2 + $0x48] sm:$0xff]  ;;  %v2188_v14 = vld [vmem:[#allocation2 + $0x50] sm:$0xff]  ;;  %vm612_vm4 = vcmask 261120   ;;  %p1443_p5 = scmp.ne.s32.totalorder %s2031_s19, 1 }
 0x1e0   : > { %1632 = vmatprep.mubr.f32.mxu0 %v411_v4  ;;  %v2180_v8 = vld [vmem:[#allocation2 + $0x40] sm:$0xff]  ;;  %v593_v11 = vld [vmem:[%s2047_s27 + $0x28] sm:$0xff]  ;;  %v2190_v15 = vld [vmem:[#allocation2 + $0x58] sm:$0xff] }
 0x1e1   : > { %v2153_v59 = vld [vmem:[#allocation2] sm:$0xff]  ;;  %v1801_v13 = vpack.c.bf16 %v2182_v9, %v2180_v8  ;;  %v1805_v16 = vpack.c.bf16 %v2190_v15, %v2188_v14  ;;  %v2196_v18 = vld [vmem:[#allocation2 + $0x68] sm:$0xff]  ;;  %v2200_v20 = vld [vmem:[#allocation2 + $0x70] sm:$0xff] }
 0x1e2   : > { %v2155_v60 = vld [vmem:[#allocation2 + $0x8] sm:$0xff]  ;;  %v592_v10 = vld [vmem:[%s2047_s27 + $0x20] sm:$0xff]  ;;  %v2202_v21 = vld [vmem:[#allocation2 + $0x78] sm:$0xff] }
 0x1e3   : > { %v2157_v61 = vld [vmem:[#allocation2 + $0x10] sm:$0xff]  ;;  %v1785_v62 = vpack.c.bf16 %v2155_v60, %v2153_v59  ;;  %v1817_v12 = vpack.c.bf16 %v593_v11, %v592_v10  ;;  %v2194_v17 = vld [vmem:[#allocation2 + $0x60] sm:$0xff]  ;;  %v1813_v22 = vpack.c.bf16 %v2202_v21, %v2200_v20  ;;  %v412_v23 = vld [vmem:[%s2542_s0 + $0x8] sm:$0xff] }
 0x1e4   : > { %v2161_v63 = vld [vmem:[#allocation2 + $0x18] sm:$0xff]  ;;  %v1809_v19 = vpack.c.bf16 %v2196_v18, %v2194_v17  ;;  %v413_v24 = vld [vmem:[%s2542_s0 + $0x10] sm:$0xff]  ;;  %v415_v26 = vld [vmem:[%s2542_s0 + $0x20] sm:$0xff] }
 0x1e5   : > { %v1789_v0 = vpack.c.bf16 %v2161_v63, %v2157_v61  ;;  %v2165_v1 = vld [vmem:[#allocation2 + $0x20] sm:$0xff]  ;;  %v2167_v2 = vld [vmem:[#allocation2 + $0x28] sm:$0xff]  ;;  %1786 = vmatprep.subr.bf16.mxu0 %v1785_v62  ;;  %1818 = vmatprep.subr.bf16.mxu1 %v1817_v12  ;;  %v414_v25 = vld [vmem:[%s2542_s0 + $0x18] sm:$0xff] }
 0x1e6   : > { %1788 = vmatpush3.bf16.msra.mxu0 %v1785_v62  ;;  %v1793_v3 = vpack.c.bf16 %v2167_v2, %v2165_v1  ;;  %v2174_v5 = vld [vmem:[#allocation2 + $0x30] sm:$0xff]  ;;  %v2176_v6 = vld [vmem:[#allocation2 + $0x38] sm:$0xff]  ;;  %1820 = vmatpush3.bf16.msra.mxu1 %v1817_v12  ;;  %v416_v27 = vld [vmem:[%s2542_s0 + $0x28] sm:$0xff] }
 0x1e7   : > { %1790 = vmatprep.subr.bf16.mxu0 %v1789_v0  ;;  %v1797_v7 = vpack.c.bf16 %v2176_v6, %v2174_v5  ;;  %v417_v28 = vld [vmem:[%s2542_s0 + $0x30] sm:$0xff]  ;;  %v418_v29 = vld [vmem:[%s2542_s0 + $0x38] sm:$0xff]  ;;  %v419_v30 = vld [vmem:[%s2542_s0 + $0x40] sm:$0xff] }
 0x1e8   : > { %v420_v31 = vld [vmem:[%s2542_s0 + $0x48] sm:$0xff]  ;;  %v421_v32 = vld [vmem:[%s2542_s0 + $0x50] sm:$0xff]  ;;  %v422_v33 = vld [vmem:[%s2542_s0 + $0x58] sm:$0xff] }
 0x1e9   : > { %v423_v34 = vld [vmem:[%s2542_s0 + $0x60] sm:$0xff]  ;;  %v424_v35 = vld [vmem:[%s2542_s0 + $0x68] sm:$0xff]  ;;  %v425_v36 = vld [vmem:[%s2542_s0 + $0x70] sm:$0xff] }
 0x1ea   : > { %1792 = vmatpush3.bf16.msra.mxu0 %v1789_v0  ;;  %v426_v37 = vld [vmem:[%s2542_s0 + $0x78] sm:$0xff]  ;;  %v594_v38 = vld [vmem:[%s2047_s27 + $0x30] sm:$0xff]  ;;  %v588_v41 = vld [vmem:[%s2047_s27] sm:$0xff] }
 0x1eb   : > { %1794 = vmatprep.subr.bf16.mxu0 %v1793_v3  ;;  %v595_v39 = vld [vmem:[%s2047_s27 + $0x38] sm:$0xff]  ;;  %v589_v42 = vld [vmem:[%s2047_s27 + $0x8] sm:$0xff]  ;;  %v590_v48 = vld [vmem:[%s2047_s27 + $0x10] sm:$0xff] }
 0x1ec   : > { %v1821_v40 = vpack.c.bf16 %v595_v39, %v594_v38  ;;  %v1825_v43 = vpack.c.bf16 %v589_v42, %v588_v41  ;;  %v591_v49 = vld [vmem:[%s2047_s27 + $0x18] sm:$0xff] }
 0x1ed   : > { %v1829_v55 = vpack.c.bf16 %v591_v49, %v590_v48 }
 0x1ee   : > { %1796 = vmatpush3.bf16.msra.mxu0 %v1793_v3  ;;  %1822 = vmatprep.subr.bf16.mxu1 %v1821_v40 }
 0x1ef   : > { %1798 = vmatprep.subr.bf16.mxu0 %v1797_v7  ;;  %1824 = vmatpush3.bf16.msra.mxu1 %v1821_v40 }
 0x1f0   : > { %1826 = vmatprep.subr.bf16.mxu1 %v1825_v43 }
 0x1f2   : > { %1800 = vmatpush3.bf16.msra.mxu0 %v1797_v7 }
 0x1f3   : > { %1802 = vmatprep.subr.bf16.mxu0 %v1801_v13 }
 0x1f6   : > { %1804 = vmatpush3.bf16.msra.mxu0 %v1801_v13 }
 0x1f7   : > { %1806 = vmatprep.subr.bf16.mxu0 %v1805_v16 }
 0x1fa   : > { %1808 = vmatpush3.bf16.msra.mxu0 %v1805_v16 }
 0x1fb   : > { %1810 = vmatprep.subr.bf16.mxu0 %v1809_v19 }
 0x1fe   : > { %1812 = vmatpush3.bf16.msra.mxu0 %v1809_v19 }
 0x1ff   : > { %1814 = vmatprep.subr.bf16.mxu0 %v1813_v22 }
 0x202   : > { %1816 = vmatpush3.bf16.msra.mxu0 %v1813_v22 }
 0x205   : > { %1633 = vmatmul.mubr.f32.vlgmr.msra.gmra.mrb[0].mxu0 %v412_v23 }
 0x206   : > { %1635 = vmatprep.mubr.f32.mxu0 %v413_v24 }
 0x209   : > { %1636 = vmatmul.mubr.f32.gmra.mrb[2].mxu0 %v414_v25 }
 0x20a   : > { %1638 = vmatprep.mubr.f32.mxu0 %v415_v26 }
 0x20d   : > { %1639 = vmatmul.mubr.f32.gmra.mrb[4].mxu0 %v416_v27 }
 0x20e   : > { %1641 = vmatprep.mubr.f32.mxu0 %v417_v28 }
 0x211   : > { %1642 = vmatmul.mubr.f32.gmra.mrb[6].mxu0 %v418_v29 }
 0x212   : > { %1644 = vmatprep.mubr.f32.mxu0 %v419_v30 }
 0x215   : > { %1645 = vmatmul.mubr.f32.gmra.mrb[8].mxu0 %v420_v31 }
 0x216   : > { %1647 = vmatprep.mubr.f32.mxu0 %v421_v32 }
 0x219   : > { %1648 = vmatmul.mubr.f32.gmra.mrb[10].mxu0 %v422_v33 }
 0x21a   : > { %1650 = vmatprep.mubr.f32.mxu0 %v423_v34 }
 0x21d   : > { %1651 = vmatmul.mubr.f32.gmra.mrb[12].mxu0 %v424_v35 }
 0x21e   : > { %1653 = vmatprep.mubr.f32.mxu0 %v425_v36 }
 0x221   : > { %1654 = vmatmul.mubr.f32.gmra.mrb[14].mxu0 %v426_v37 }
 0x2d8   : > { %v2255_v44 = vpop.f32.mrb[0].mxu0 }
 0x2d9   : > { %v573_v45 = vsub.f32 %v2255_v44, %v2155_v60  ;;  %v2259_v46 = vpop.f32.mrb[1].mxu0 }
 0x2da   : > { %v572_v47 = vsub.f32 %v2259_v46, %v2153_v59 }
 0x2db   : > { %v597_v52 = vmul.f32 %v573_v45, %v2155_v60 }
 0x2dc   : > { %v2265_v50 = vpop.f32.mrb[2].mxu0  ;;  %v596_v51 = vmul.f32 %v572_v47, %v2153_v59 }
 0x2dd   : > { %v575_v53 = vsub.f32 %v2265_v50, %v2161_v63  ;;  %v503_v54 = vpop.f32.mrb[3].mxu0 }
 0x2de   : > { %v574_v56 = vsub.f32 %v503_v54, %v2157_v61  ;;  %1664 = vmatprep.mubr.msk.f32.mxu1 %vm612_vm4, %v596_v51 }
 0x2df   : > { %1665 = vmatmul.mubr.msk.f32.vlgmr.msra.gmra.mrb[0].mxu1 %vm612_vm4, %v597_v52  ;;  %v599_v62 = vmul.f32 %v575_v53, %v2161_v63 }
 0x2e0   : > { %v598_v57 = vmul.f32 %v574_v56, %v2157_v61  ;;  %v1640_v58 = vpop.f32.mrb[4].mxu0  ;;  %1828 = vmatpush3.bf16.msra.mxu1 %v1825_v43 }
 0x2e1   : > { %v577_v59 = vsub.f32 %v1640_v58, %v2167_v2  ;;  %v513_v60 = vpop.f32.mrb[5].mxu0  ;;  %1830 = vmatprep.subr.bf16.mxu1 %v1829_v55 }
 0x2e2   : > { %v576_v0 = vsub.f32 %v513_v60, %v2165_v1  ;;  %1667 = vmatprep.mubr.msk.f32.mxu1 %vm612_vm4, %v598_v57 }
 0x2e3   : > { %1668 = vmatmul.mubr.msk.f32.gmra.mrb[2].mxu1 %vm612_vm4, %v599_v62  ;;  %v601_v61 = vmul.f32 %v577_v59, %v2167_v2 }
 0x2e4   : > { %v600_v3 = vmul.f32 %v576_v0, %v2165_v1  ;;  %v1643_v4 = vpop.f32.mrb[6].mxu0  ;;  %1832 = vmatpush3.bf16.msra.mxu1 %v1829_v55 }
 0x2e5   : > { %v579_v7 = vsub.f32 %v1643_v4, %v2176_v6  ;;  %v523_v10 = vpop.f32.mrb[7].mxu0 }
 0x2e6   : > { %v578_v63 = vsub.f32 %v523_v10, %v2174_v5  ;;  %1670 = vmatprep.mubr.msk.f32.mxu1 %vm612_vm4, %v600_v3 }
 0x2e7   : > { %1671 = vmatmul.mubr.msk.f32.gmra.mrb[4].mxu1 %vm612_vm4, %v601_v61  ;;  %v603_v13 = vmul.f32 %v579_v7, %v2176_v6 }
 0x2e8   : > { %v602_v11 = vmul.f32 %v578_v63, %v2174_v5  ;;  %v1646_v12 = vpop.f32.mrb[8].mxu0 }
 0x2e9   : > { %v581_v1 = vsub.f32 %v1646_v12, %v2182_v9  ;;  %v533_v16 = vpop.f32.mrb[9].mxu0 }
 0x2ea   : > { %v580_v19 = vsub.f32 %v533_v16, %v2180_v8  ;;  %1673 = vmatprep.mubr.msk.f32.mxu1 %vm612_vm4, %v602_v11 }
 0x2eb   : > { %1674 = vmatmul.mubr.msk.f32.gmra.mrb[6].mxu1 %vm612_vm4, %v603_v13  ;;  %v605_v23 = vmul.f32 %v581_v1, %v2182_v9 }
 0x2ec   : > { %v604_v2 = vmul.f32 %v580_v19, %v2180_v8  ;;  %v1649_v22 = vpop.f32.mrb[10].mxu0 }
 0x2ed   : > { %v583_v24 = vsub.f32 %v1649_v22, %v2190_v15  ;;  %v543_v5 = vpop.f32.mrb[11].mxu0 }
 0x2ee   : > { %v582_v25 = vsub.f32 %v543_v5, %v2188_v14  ;;  %1676 = vmatprep.mubr.msk.f32.mxu1 %vm612_vm4, %v604_v2 }
 0x2ef   : > { %1677 = vmatmul.mubr.msk.f32.gmra.mrb[8].mxu1 %vm612_vm4, %v605_v23  ;;  %v607_v27 = vmul.f32 %v583_v24, %v2190_v15 }
 0x2f0   : > { %v606_v6 = vmul.f32 %v582_v25, %v2188_v14  ;;  %v1652_v26 = vpop.f32.mrb[12].mxu0 }
 0x2f1   : > { %v585_v28 = vsub.f32 %v1652_v26, %v2196_v18  ;;  %v553_v8 = vpop.f32.mrb[13].mxu0 }
 0x2f2   : > { %v584_v29 = vsub.f32 %v553_v8, %v2194_v17  ;;  %1679 = vmatprep.mubr.msk.f32.mxu1 %vm612_vm4, %v606_v6 }
 0x2f3   : > { %1680 = vmatmul.mubr.msk.f32.gmra.mrb[10].mxu1 %vm612_vm4, %v607_v27  ;;  %v609_v31 = vmul.f32 %v585_v28, %v2196_v18 }
 0x2f4   : > { %v608_v9 = vmul.f32 %v584_v29, %v2194_v17  ;;  %v1655_v30 = vpop.f32.mrb[14].mxu0  ;;  %v2338_v17 = vld [vmem:[%s224_s24] ss:$0 sm:$0xff] }
 0x2f5   : > { %v587_v32 = vsub.f32 %v1655_v30, %v2202_v21  ;;  %v563_v14 = vpop.f32.mrb[15].mxu0 }
 0x2f6   : > { %v586_v33 = vsub.f32 %v563_v14, %v2200_v20  ;;  %1682 = vmatprep.mubr.msk.f32.mxu1 %vm612_vm4, %v608_v9 }
 0x2f7   : > { %1683 = vmatmul.mubr.msk.f32.gmra.mrb[12].mxu1 %vm612_vm4, %v609_v31  ;;  %v611_v34 = vmul.f32 %v587_v32, %v2202_v21 }
 0x2f8   : > { %v610_v15 = vmul.f32 %v586_v33, %v2200_v20 }
 0x2fa   : > { %1685 = vmatprep.mubr.msk.f32.mxu1 %vm612_vm4, %v610_v15 }
 0x2fb   : > { %1686 = vmatmul.mubr.msk.f32.gmra.mrb[14].mxu1 %vm612_vm4, %v611_v34 }
 0x2fc   : > { %1696 = vmatprep.mubr.msk.f32.mxu1 %vm612_vm4, %v2259_v46 }
 0x2ff   : > { %1697 = vmatmul.mubr.msk.f32.vlgmr.msra.gmra.mrb[0].mxu1 %vm612_vm4, %v2255_v44 }
 0x300   : > { %1699 = vmatprep.mubr.msk.f32.mxu1 %vm612_vm4, %v503_v54 }
 0x303   : > { %1700 = vmatmul.mubr.msk.f32.gmra.mrb[2].mxu1 %vm612_vm4, %v2265_v50 }
 0x304   : > { %1702 = vmatprep.mubr.msk.f32.mxu1 %vm612_vm4, %v513_v60 }
 0x307   : > { %1703 = vmatmul.mubr.msk.f32.gmra.mrb[4].mxu1 %vm612_vm4, %v1640_v58 }
 0x308   : > { %1705 = vmatprep.mubr.msk.f32.mxu1 %vm612_vm4, %v523_v10 }
 0x30b   : > { %1706 = vmatmul.mubr.msk.f32.gmra.mrb[6].mxu1 %vm612_vm4, %v1643_v4 }
 0x30c   : > { %1708 = vmatprep.mubr.msk.f32.mxu1 %vm612_vm4, %v533_v16 }
 0x30f   : > { %1709 = vmatmul.mubr.msk.f32.gmra.mrb[8].mxu1 %vm612_vm4, %v1646_v12 }
 0x310   : > { %1711 = vmatprep.mubr.msk.f32.mxu1 %vm612_vm4, %v543_v5 }
 0x313   : > { %1712 = vmatmul.mubr.msk.f32.gmra.mrb[10].mxu1 %vm612_vm4, %v1649_v22 }
 0x314   : > { %1714 = vmatprep.mubr.msk.f32.mxu1 %vm612_vm4, %v553_v8 }
 0x317   : > { %1715 = vmatmul.mubr.msk.f32.gmra.mrb[12].mxu1 %vm612_vm4, %v1652_v26 }
 0x318   : > { %1717 = vmatprep.mubr.msk.f32.mxu1 %vm612_vm4, %v563_v14 }
 0x31b   : > { %1718 = vmatmul.mubr.msk.f32.gmra.mrb[14].mxu1 %vm612_vm4, %v1655_v30 }
 0x3d2   : > { %v1698_v18 = vpop.f32.mrb[0].mxu1 }
 0x3d3   : > { %v1007_v20 = vadd.f32 %v1698_v18, %v2338_v17  ;;  %v920_v21 = vpop.f32.mrb[1].mxu1 }
 0x3d4   : > { %v1006_v35 = vadd.f32 %v2338_v17, %v920_v21 }
 0x3d5   : > { %vm1023_vm5 = vcmp.ge.f32.partialorder %v1007_v20, 0.0  ;;  %v1039_v36 = vmul.f32 0.01, %v1007_v20 }
 0x3d6   : > { %vm1022_vm6 = vcmp.ge.f32.partialorder %v1006_v35, 0.0  ;;  %v1038_v37 = vmul.f32 0.01, %v1006_v35  ;;  %v1701_v38 = vpop.f32.mrb[2].mxu1 }
 0x3d7   : > { %v1009_v39 = vadd.f32 %v1701_v38, %v2338_v17  ;;  %v930_v40 = vpop.f32.mrb[3].mxu1  ;;  %v2343_v41 = vsel %vm1023_vm5, %v1007_v20, %v1039_v36 }
 0x3d8   : > { %v1008_v42 = vadd.f32 %v2338_v17, %v930_v40  ;;  %v2346_v43 = vsel %vm1022_vm6, %v1006_v35, %v1038_v37  ;;  %1071 = vst.msk [vmem:[#allocation2 + $0x8] sm:$0xff] %vm612_vm4, %v2343_v41  ;;  %v1087_v52 = vmul.f32 %v2343_v41, %v2343_v41  ;;  %vm1992_vm6 = vmmov 0  }
 0x3d9   : > { %vm1025_vm7 = vcmp.ge.f32.partialorder %v1009_v39, 0.0  ;;  %v1041_v44 = vmul.f32 0.01, %v1009_v39  ;;  %v1086_v45 = vmul.f32 %v2346_v43, %v2346_v43  ;;  %1070 = vst.msk [vmem:[#allocation2] sm:$0xff] %vm612_vm4, %v2346_v43 }
 0x3da   : > { %vm1024_vm8 = vcmp.ge.f32.partialorder %v1008_v42, 0.0  ;;  %v1040_v46 = vmul.f32 0.01, %v1008_v42  ;;  %v1704_v47 = vpop.f32.mrb[4].mxu1  ;;  %v1105_v3 = vsel %vm612_vm4, %v1087_v52, 0.0 }
 0x3db   : > { %v1011_v48 = vadd.f32 %v1704_v47, %v2338_v17  ;;  %v940_v49 = vpop.f32.mrb[5].mxu1  ;;  %v1102_v50 = vsel %vm612_vm4, %v1086_v45, 0.0  ;;  %v2356_v51 = vsel %vm1025_vm7, %v1009_v39, %v1041_v44  ;;  %vm1311_vm7 = vcmask 7168  }
 0x3dc   : > { %v1010_v53 = vadd.f32 %v2338_v17, %v940_v49  ;;  %1103 = vadd.xlane.f32.xlu0 %v1102_v50  ;;  %v1089_v54 = vmul.f32 %v2356_v51, %v2356_v51  ;;  %1073 = vst.msk [vmem:[#allocation2 + $0x18] sm:$0xff] %vm612_vm4, %v2356_v51  ;;  %v2365_v55 = vsel %vm1024_vm8, %v1008_v42, %v1040_v46 }
 0x3dd   : > { %vm1027_vm9 = vcmp.ge.f32.partialorder %v1011_v48, 0.0  ;;  %v1043_v56 = vmul.f32 0.01, %v1011_v48  ;;  %1072 = vst.msk [vmem:[#allocation2 + $0x10] sm:$0xff] %vm612_vm4, %v2365_v55  ;;  %v1088_v59 = vmul.f32 %v2365_v55, %v2365_v55 }
 0x3de   : > { %vm1026_vm10 = vcmp.ge.f32.partialorder %v1010_v53, 0.0  ;;  %v1042_v57 = vmul.f32 0.01, %v1010_v53  ;;  %v1707_v58 = vpop.f32.mrb[6].mxu1  ;;  %v1111_v62 = vsel %vm612_vm4, %v1089_v54, 0.0 }
 0x3df   : > { %v1013_v60 = vadd.f32 %v1707_v58, %v2338_v17  ;;  %1112 = vadd.xlane.f32.xlu1 %v1111_v62  ;;  %v950_v0 = vpop.f32.mrb[7].mxu1  ;;  %v2374_v4 = vsel %vm1027_vm9, %v1011_v48, %v1043_v56  ;;  %v1108_v13 = vsel %vm612_vm4, %v1088_v59, 0.0 }
 0x3e0   : > { %v1012_v61 = vadd.f32 %v2338_v17, %v950_v0  ;;  %1106 = vadd.xlane.f32.xlu0 %v1105_v3  ;;  %v2377_v7 = vsel %vm1026_vm10, %v1010_v53, %v1042_v57  ;;  %1075 = vst.msk [vmem:[#allocation2 + $0x28] sm:$0xff] %vm612_vm4, %v2374_v4  ;;  %v1091_v1 = vmul.f32 %v2374_v4, %v2374_v4 }
 0x3e1   : > { %vm1029_vm11 = vcmp.ge.f32.partialorder %v1013_v60, 0.0  ;;  %v1045_v10 = vmul.f32 0.01, %v1013_v60  ;;  %v1090_v63 = vmul.f32 %v2377_v7, %v2377_v7  ;;  %1074 = vst.msk [vmem:[#allocation2 + $0x20] sm:$0xff] %vm612_vm4, %v2377_v7 }
 0x3e2   : > { %vm1028_vm12 = vcmp.ge.f32.partialorder %v1012_v61, 0.0  ;;  %v1044_v11 = vmul.f32 0.01, %v1012_v61  ;;  %v1710_v12 = vpop.f32.mrb[8].mxu1  ;;  %v1117_v27 = vsel %vm612_vm4, %v1091_v1, 0.0 }
 0x3e3   : > { %v1015_v16 = vadd.f32 %v1710_v12, %v2338_v17  ;;  %1109 = vadd.xlane.f32.xlu1 %v1108_v13  ;;  %v960_v19 = vpop.f32.mrb[9].mxu1  ;;  %v1114_v2 = vsel %vm612_vm4, %v1090_v63, 0.0  ;;  %v2390_v22 = vsel %vm1029_vm11, %v1013_v60, %v1045_v10  ;;  %v1991_v12 = vmov 0.0|0.0  }
 0x3e4   : > { %v1014_v23 = vadd.f32 %v2338_v17, %v960_v19  ;;  %1115 = vadd.xlane.f32.xlu0 %v1114_v2  ;;  %v2393_v24 = vsel %vm1028_vm12, %v1012_v61, %v1044_v11  ;;  %1077 = vst.msk [vmem:[#allocation2 + $0x38] sm:$0xff] %vm612_vm4, %v2390_v22  ;;  %v1093_v28 = vmul.f32 %v2390_v22, %v2390_v22  ;;  %v1993_v13 = vmov 0.0  }
 0x3e5   : > { %vm1031_vm13 = vcmp.ge.f32.partialorder %v1015_v16, 0.0  ;;  %v1047_v5 = vmul.f32 0.01, %v1015_v16  ;;  %v1092_v25 = vmul.f32 %v2393_v24, %v2393_v24  ;;  %1076 = vst.msk [vmem:[#allocation2 + $0x30] sm:$0xff] %vm612_vm4, %v2393_v24  ;;  %1833 = vmatprep.subr.bf16.mxu0 %v1991_v12  ;;  %1752 = vmatprep.mubr.msk.f32.mxu0 %vm1992_vm6, %v1993_v13 }
 0x3e6   : > { %vm1030_vm14 = vcmp.ge.f32.partialorder %v1014_v23, 0.0  ;;  %v1046_v6 = vmul.f32 0.01, %v1014_v23  ;;  %v1713_v26 = vpop.f32.mrb[10].mxu1  ;;  %v1123_v18 = vsel %vm612_vm4, %v1093_v28, 0.0 }
 0x3e7   : > { %v1017_v8 = vadd.f32 %v1713_v26, %v2338_v17  ;;  %1118 = vadd.xlane.f32.xlu1 %v1117_v27  ;;  %v970_v29 = vpop.f32.mrb[11].mxu1  ;;  %v1120_v9 = vsel %vm612_vm4, %v1092_v25, 0.0  ;;  %v2406_v30 = vsel %vm1031_vm13, %v1015_v16, %v1047_v5 }
 0x3e8   : > { %v1016_v31 = vadd.f32 %v2338_v17, %v970_v29  ;;  %1121 = vadd.xlane.f32.xlu0 %v1120_v9  ;;  %v2409_v32 = vsel %vm1030_vm14, %v1014_v23, %v1046_v6  ;;  %1079 = vst.msk [vmem:[#allocation2 + $0x48] sm:$0xff] %vm612_vm4, %v2406_v30  ;;  %v1095_v20 = vmul.f32 %v2406_v30, %v2406_v30 }
 0x3e9   : > { %vm1033_vm15 = vcmp.ge.f32.partialorder %v1017_v8, 0.0  ;;  %v1049_v14 = vmul.f32 0.01, %v1017_v8  ;;  %v1094_v33 = vmul.f32 %v2409_v32, %v2409_v32  ;;  %1078 = vst.msk [vmem:[#allocation2 + $0x40] sm:$0xff] %vm612_vm4, %v2409_v32 }
 0x3ea   : > { %vm1032_vm0 = vcmp.ge.f32.partialorder %v1016_v31, 0.0  ;;  %v1048_v15 = vmul.f32 0.01, %v1016_v31  ;;  %v1716_v34 = vpop.f32.mrb[12].mxu1  ;;  %v1129_v46 = vsel %vm612_vm4, %v1095_v20, 0.0 }
 0x3eb   : > { %v1019_v21 = vadd.f32 %v1716_v34, %v2338_v17  ;;  %1124 = vadd.xlane.f32.xlu1 %v1123_v18  ;;  %v980_v35 = vpop.f32.mrb[13].mxu1  ;;  %v1126_v36 = vsel %vm612_vm4, %v1094_v33, 0.0  ;;  %v2422_v37 = vsel %vm1033_vm15, %v1017_v8, %v1049_v14 }
 0x3ec   : > { %v1018_v38 = vadd.f32 %v2338_v17, %v980_v35  ;;  %1127 = vadd.xlane.f32.xlu0 %v1126_v36  ;;  %v2425_v39 = vsel %vm1032_vm0, %v1016_v31, %v1048_v15  ;;  %1081 = vst.msk [vmem:[#allocation2 + $0x58] sm:$0xff] %vm612_vm4, %v2422_v37  ;;  %v1097_v47 = vmul.f32 %v2422_v37, %v2422_v37 }
 0x3ed   : > { %vm1035_vm1 = vcmp.ge.f32.partialorder %v1019_v21, 0.0  ;;  %v1051_v40 = vmul.f32 0.01, %v1019_v21  ;;  %v1096_v42 = vmul.f32 %v2425_v39, %v2425_v39  ;;  %1080 = vst.msk [vmem:[#allocation2 + $0x50] sm:$0xff] %vm612_vm4, %v2425_v39 }
 0x3ee   : > { %vm1034_vm2 = vcmp.ge.f32.partialorder %v1018_v38, 0.0  ;;  %v1050_v44 = vmul.f32 0.01, %v1018_v38  ;;  %v1719_v45 = vpop.f32.mrb[14].mxu1  ;;  %v1135_v62 = vsel %vm612_vm4, %v1097_v47, 0.0 }
 0x3ef   : > { %v1021_v48 = vadd.f32 %v1719_v45, %v2338_v17  ;;  %1130 = vadd.xlane.f32.xlu1 %v1129_v46  ;;  %v990_v49 = vpop.f32.mrb[15].mxu1  ;;  %v1132_v50 = vsel %vm612_vm4, %v1096_v42, 0.0  ;;  %v2438_v52 = vsel %vm1035_vm1, %v1019_v21, %v1051_v40 }
 0x3f0   : > { %v1020_v53 = vadd.f32 %v2338_v17, %v990_v49  ;;  %1133 = vadd.xlane.f32.xlu0 %v1132_v50  ;;  %v2441_v54 = vsel %vm1034_vm2, %v1018_v38, %v1050_v44  ;;  %1083 = vst.msk [vmem:[#allocation2 + $0x68] sm:$0xff] %vm612_vm4, %v2438_v52  ;;  %v1099_v17 = vmul.f32 %v2438_v52, %v2438_v52 }
 0x3f1   : > { %vm1037_vm3 = vcmp.ge.f32.partialorder %v1021_v48, 0.0  ;;  %v1053_v56 = vmul.f32 0.01, %v1021_v48  ;;  %v1098_v57 = vmul.f32 %v2441_v54, %v2441_v54  ;;  %1082 = vst.msk [vmem:[#allocation2 + $0x60] sm:$0xff] %vm612_vm4, %v2441_v54 }
 0x3f2   : > { %vm1036_vm5 = vcmp.ge.f32.partialorder %v1020_v53, 0.0  ;;  %v1052_v58 = vmul.f32 0.01, %v1020_v53  ;;  %v1141_v61 = vsel %vm612_vm4, %v1099_v17, 0.0 }
 0x3f3   : > { %1136 = vadd.xlane.f32.xlu1 %v1135_v62  ;;  %v1138_v59 = vsel %vm612_vm4, %v1098_v57, 0.0  ;;  %v2453_v60 = vsel %vm1037_vm3, %v1021_v48, %v1053_v56 }
 0x3f4   : > { %1139 = vadd.xlane.f32.xlu0 %v1138_v59  ;;  %v2455_v0 = vsel %vm1036_vm5, %v1020_v53, %v1052_v58  ;;  %1085 = vst.msk [vmem:[#allocation2 + $0x78] sm:$0xff] %vm612_vm4, %v2453_v60  ;;  %v1101_v10 = vmul.f32 %v2453_v60, %v2453_v60 }
 0x3f5   : > { %v1100_v3 = vmul.f32 %v2455_v0, %v2455_v0  ;;  %1084 = vst.msk [vmem:[#allocation2 + $0x70] sm:$0xff] %vm612_vm4, %v2455_v0 }
 0x3f6   : > { %v1147_v11 = vsel %vm612_vm4, %v1101_v10, 0.0 }
 0x3f7   : > { %1142 = vadd.xlane.f32.xlu1 %v1141_v61  ;;  %v1144_v63 = vsel %vm612_vm4, %v1100_v3, 0.0 }
 0x3f8   : > { %1145 = vadd.xlane.f32.xlu0 %v1144_v63 }
 0x3fb   : > { %1148 = vadd.xlane.f32.xlu1 %v1147_v11 }
 0x469   : > { %v1104_v1 = vpop.xlane.xlu0 %1103 }
 0x46a   : > { %v1150_v16 = vmax.f32 %v1104_v1, 1e-24 }
 0x46c   : > { %v1113_v19 = vpop.xlane.xlu1 %1112  ;;  %1914 = vrsqrt.f32 %v1150_v16 }
 0x46d   : > { %v1153_v2 = vmax.f32 %v1113_v19, 1e-24  ;;  %v1107_v23 = vpop.xlane.xlu0 %1106 }
 0x46e   : > { %v1151_v5 = vmax.f32 %v1107_v23, 1e-24 }
 0x470   : > { %1916 = vrsqrt.f32 %v1151_v5  ;;  %v1110_v25 = vpop.xlane.xlu1 %1109 }
 0x471   : > { %1918 = vrsqrt.f32 %v1153_v2  ;;  %v1152_v6 = vmax.f32 %v1110_v25, 1e-24  ;;  %v1116_v26 = vpop.xlane.xlu0 %1115 }
 0x472   : > { %v1154_v27 = vmax.f32 %v1116_v26, 1e-24 }
 0x473   : > { %1920 = vrsqrt.f32 %v1152_v6 }
 0x474   : > { %v1119_v28 = vpop.xlane.xlu1 %1118  ;;  %1922 = vrsqrt.f32 %v1154_v27 }
 0x475   : > { %v1155_v8 = vmax.f32 %v1119_v28, 1e-24  ;;  %v1122_v29 = vpop.xlane.xlu0 %1121 }
 0x476   : > { %v1156_v9 = vmax.f32 %v1122_v29, 1e-24  ;;  %v1915_v31 = vpop.eup %1914 }
 0x477   : > { %1924 = vrsqrt.f32 %v1155_v8  ;;  %v1182_v21 = vmul.f32 %v1915_v31, %v2346_v43 }
 0x478   : > { %v1125_v14 = vpop.xlane.xlu1 %1124  ;;  %1926 = vrsqrt.f32 %v1156_v9 }
 0x479   : > { %v1157_v33 = vmax.f32 %v1125_v14, 1e-24  ;;  %v1128_v15 = vpop.xlane.xlu0 %1127 }
 0x47a   : > { %v1917_v34 = vpop.eup %1916  ;;  %v1158_v18 = vmax.f32 %v1128_v15, 1e-24 }
 0x47b   : > { %v1919_v20 = vpop.eup %1918  ;;  %1928 = vrsqrt.f32 %v1157_v33  ;;  %v1183_v35 = vmul.f32 %v1917_v34, %v2343_v41 }
 0x47c   : > { %v1131_v36 = vpop.xlane.xlu1 %1130  ;;  %1930 = vrsqrt.f32 %v1158_v18  ;;  %v1185_v47 = vmul.f32 %v1919_v20, %v2356_v51 }
 0x47d   : > { %v1921_v38 = vpop.eup %1920  ;;  %v1159_v40 = vmax.f32 %v1131_v36, 1e-24  ;;  %v1134_v42 = vpop.xlane.xlu0 %1133  ;;  %v1834_v44 = vpack.c.bf16 %v1183_v35, %v1182_v21 }
 0x47e   : > { %v1160_v45 = vmax.f32 %v1134_v42, 1e-24  ;;  %v1184_v46 = vmul.f32 %v1921_v38, %v2365_v55  ;;  %v1923_v48 = vpop.eup %1922 }
 0x47f   : > { %1932 = vrsqrt.f32 %v1159_v40  ;;  %1835 = vmatpush3.bf16.msra.mxu0 %v1834_v44  ;;  %v1186_v57 = vmul.f32 %v1923_v48, %v2377_v7 }
 0x480   : > { %v1137_v49 = vpop.xlane.xlu1 %1136  ;;  %1836 = vmatprep.subr.bf16.mxu0 %v1991_v12  ;;  %v1837_v43 = vpack.c.bf16 %v1185_v47, %v1184_v46  ;;  %1934 = vrsqrt.f32 %v1160_v45  ;;  %v1304_v45 = vld [vmem:[#allocation3] sm:$0xff] }
 0x481   : > { %v1925_v50 = vpop.eup %1924  ;;  %v1161_v41 = vmax.f32 %v1137_v49, 1e-24  ;;  %v1140_v53 = vpop.xlane.xlu0 %1139 }
 0x482   : > { %v1162_v56 = vmax.f32 %v1140_v53, 1e-24  ;;  %v1187_v58 = vmul.f32 %v1925_v50, %v2374_v4  ;;  %v1927_v62 = vpop.eup %1926 }
 0x483   : > { %1936 = vrsqrt.f32 %v1161_v41  ;;  %1838 = vmatpush3.bf16.msra.mxu0 %v1837_v43  ;;  %v1188_v10 = vmul.f32 %v1927_v62, %v2393_v24 }
 0x484   : > { %v1143_v51 = vpop.xlane.xlu1 %1142  ;;  %1839 = vmatprep.subr.bf16.mxu0 %v1991_v12  ;;  %v1840_v55 = vpack.c.bf16 %v1187_v58, %v1186_v57  ;;  %1938 = vrsqrt.f32 %v1162_v56  ;;  %v1281_v57 = vld [vmem:[#allocation4] sm:$0x1] }
 0x485   : > { %v1929_v17 = vpop.eup %1928  ;;  %v1163_v59 = vmax.f32 %v1143_v51, 1e-24  ;;  %v1146_v3 = vpop.xlane.xlu0 %1145 }
 0x486   : > { %v1164_v61 = vmax.f32 %v1146_v3, 1e-24  ;;  %v1189_v63 = vmul.f32 %v1929_v17, %v2390_v22  ;;  %v1931_v11 = vpop.eup %1930 }
 0x487   : > { %1940 = vrsqrt.f32 %v1163_v59  ;;  %1841 = vmatpush3.bf16.msra.mxu0 %v1840_v55  ;;  %v1190_v19 = vmul.f32 %v1931_v11, %v2409_v32 }
 0x488   : > { %v1149_v4 = vpop.xlane.xlu1 %1148  ;;  %1842 = vmatprep.subr.bf16.mxu0 %v1991_v12  ;;  %v1843_v7 = vpack.c.bf16 %v1189_v63, %v1188_v10  ;;  %1942 = vrsqrt.f32 %v1164_v61 }
 0x489   : > { %v1933_v1 = vpop.eup %1932  ;;  %v1165_v16 = vmax.f32 %v1149_v4, 1e-24 }
 0x48a   : > { %v1191_v2 = vmul.f32 %v1933_v1, %v2406_v30  ;;  %v1935_v23 = vpop.eup %1934 }
 0x48b   : > { %1944 = vrsqrt.f32 %v1165_v16  ;;  %1844 = vmatpush3.bf16.msra.mxu0 %v1843_v7  ;;  %v1192_v5 = vmul.f32 %v1935_v23, %v2425_v39 }
 0x48c   : > { %1845 = vmatprep.subr.bf16.mxu0 %v1991_v12  ;;  %v1846_v22 = vpack.c.bf16 %v1191_v2, %v1190_v19 }
 0x48d   : > { %v1937_v24 = vpop.eup %1936 }
 0x48e   : > { %v1193_v25 = vmul.f32 %v1937_v24, %v2422_v37  ;;  %v1939_v6 = vpop.eup %1938 }
 0x48f   : > { %1847 = vmatpush3.bf16.msra.mxu0 %v1846_v22  ;;  %v1194_v32 = vmul.f32 %v1939_v6, %v2441_v54  ;;  %v1198_v54 = vld [vmem:[%s2546_s4] sm:$0xff] }
 0x490   : > { %1848 = vmatprep.subr.bf16.mxu0 %v1991_v12  ;;  %v1849_v26 = vpack.c.bf16 %v1193_v25, %v1192_v5 }
 0x491   : > { %v1941_v27 = vpop.eup %1940 }
 0x492   : > { %v1195_v30 = vmul.f32 %v1941_v27, %v2438_v52  ;;  %v1943_v28 = vpop.eup %1942  ;;  %v1199_v52 = vld [vmem:[%s2546_s4 + $0x8] sm:$0xff] }
 0x493   : > { %1850 = vmatpush3.bf16.msra.mxu0 %v1849_v26  ;;  %v1196_v39 = vmul.f32 %v1943_v28, %v2455_v0 }
 0x494   : > { %1851 = vmatprep.subr.bf16.mxu0 %v1991_v12  ;;  %v1852_v8 = vpack.c.bf16 %v1195_v30, %v1194_v32 }
 0x495   : > { %v1945_v29 = vpop.eup %1944 }
 0x496   : > { %v1197_v37 = vmul.f32 %v1945_v29, %v2453_v60  ;;  %v1200_v60 = vld [vmem:[%s2546_s4 + $0x10] sm:$0xff] }
 0x497   : > { %1853 = vmatpush3.bf16.msra.mxu0 %v1852_v8 }
 0x498   : > { %1854 = vmatprep.subr.bf16.mxu0 %v1991_v12  ;;  %v1855_v9 = vpack.c.bf16 %v1197_v37, %v1196_v39 }
 0x49b   : > { %1856 = vmatpush3.bf16.msra.mxu0 %v1855_v9 }
 0x49e   : > { %1753 = vmatmul.mubr.f32.vlgmr.msra.gmra.mrb[16].mxu0 %v1198_v54 }
 0x49f   : > { %1755 = vmatprep.mubr.msk.f32.mxu0 %vm1992_vm6, %v1993_v13 }
 0x4a2   : > { %1756 = vmatmul.mubr.f32.gmra.mrb[18].mxu0 %v1199_v52 }
 0x4a3   : > { %1758 = vmatprep.mubr.msk.f32.mxu0 %vm1992_vm6, %v1993_v13 }
 0x4a6   : > { %1759 = vmatmul.mubr.f32.gmra.mrb[20].mxu0 %v1200_v60 }
 0x571   : > { %v1267_v0 = vpop.f32.mrb[16].mxu0 }
 0x572   : > { %v1754_v12 = vpop.f32.mrb[17].mxu0  ;;  %v1282_v31 = vmul.f32 %v1267_v0, %v1267_v0 }
 0x574   : > { %v1285_v34 = vsel %vm612_vm4, %v1282_v31, 0.0 }
 0x575   : > { %v1272_v14 = vpop.f32.mrb[18].mxu0 }
 0x576   : > { %v1283_v33 = vmul.f32 %v1272_v14, %v1272_v14  ;;  %v1757_v15 = vpop.f32.mrb[19].mxu0 }
 0x578   : > { %v1286_v18 = vsel %vm612_vm4, %v1283_v33, 0.0 }
 0x579   : > { %v1277_v20 = vpop.f32.mrb[20].mxu0  ;;  %v1287_v21 = vadd.f32 %v1286_v18, %v1285_v34 }
 0x57a   : > { %v1284_v35 = vmul.f32 %v1277_v20, %v1277_v20  ;;  %v1305_v36 = vsub.f32 %v1272_v14, %v1277_v20  ;;  %v1760_v13 = vpop.f32.mrb[21].mxu0 }
 0x57c   : > { %v1306_v38 = vmul.f32 %v1305_v36, %v1267_v0  ;;  %v1288_v40 = vsel %vm612_vm4, %v1284_v35, 0.0 }
 0x57d   : > { %v1289_v42 = vadd.f32 %v1288_v40, %v1287_v21 }
 0x57e   : > { %v1307_v44 = vsel %vm612_vm4, %v1306_v38, 0.0  ;;  %vm1302_vm4 = vcmask 0  }
 0x57f   : > { %1308 = vadd.xlane.f32.xlu1 %v1307_v44  ;;  %1290 = vadd.xlane.f32.xlu0 %v1289_v42 }
 0x60c   : > { %v1309_v46 = vpop.xlane.xlu1 %1308  ;;  %v1291_v47 = vpop.xlane.xlu0 %1290 }
 0x60d   : > { %v1310_v48 = vadd.f32 %v1309_v46, %v1304_v45  ;;  %v1292_v49 = vrot.slane %v1291_v47, 4 }
 0x60f   : > { %1312 = vst.msk [vmem:[#allocation3] sm:$0xff] %vm1311_vm7, %v1310_v48  ;;  %v1293_v43 = vadd.f32 %v1292_v49, %v1291_v47 }
 0x611   : > { %v1294_v50 = vrot.slane %v1293_v43, 2 }
 0x613   : > { %v1295_v41 = vadd.f32 %v1294_v50, %v1293_v43 }
 0x615   : > { %v1296_v53 = vrot.slane %v1295_v41, 1 }
 0x616   : > { %v1317_v51 = vld [vmem:[#allocation3] sm:$0xff] (!%p1443_p5) }
 0x617   : > { %v1297_v56 = vadd.f32 %v1296_v53, %v1295_v41  ;;  %v1319_v55 = vand.u32 (!%p1443_p5), 2147483647, %v1317_v51  ;;  %v1318_v1 = vmin.f32 (!%p1443_p5), %v1317_v51, 0.0 }
 0x619   : > { %1891 = vpush %v1297_v56  ;;  %v1320_v17 = vsub.f32 (!%p1443_p5), 0.0, %v1319_v55 }
 0x61b   : > { %v1321_v59 = vmul.f32 (!%p1443_p5), 1.442695, %v1320_v17 }
 0x61d   : > { %1946 = vpow2.f32 (!%p1443_p5), %v1321_v59 }
 0x627   : > { %v1947_v3 = vpop.eup (!%p1443_p5), %1946 }
 0x628   : > { %v1323_v61 = vadd.f32 (!%p1443_p5), 1.0, %v1947_v3  ;;  %v1326_v10 = vmul.f32 (!%p1443_p5), -0.5, %v1947_v3  ;;  %v1329_v11 = vand.u32 (!%p1443_p5), 2147483647, %v1947_v3 }
 0x62a   : > { %1948 = vlog2.f32 (!%p1443_p5), %v1323_v61  ;;  %v1327_v63 = vadd.f32 (!%p1443_p5), 1.0, %v1326_v10  ;;  %vm1330_vm8 = vcmp.lt.f32.partialorder (!%p1443_p5), %v1329_v11, 0.0004427343 }
 0x62c   : > { %v1328_v4 = vmul.f32 (!%p1443_p5), %v1947_v3, %v1327_v63 }
 0x634   : > { %v1949_v7 = vpop.eup (!%p1443_p5), %1948 }
 0x635   : > { %v1325_v16 = vmul.f32 (!%p1443_p5), 0.6931472, %v1949_v7 }
 0x637   : > { %v1331_v19 = vsel (!%p1443_p5), %vm1330_vm8, %v1328_v4, %v1325_v16 }
 0x638   : > { %v1332_v2 = vsub.f32 (!%p1443_p5), %v1318_v1, %v1331_v19 }
 0x63a   : > { %v1333_v23 = vsel (!%p1443_p5), %vm1311_vm7, %v1332_v2, 0.0 }
 0x63b   : > { %v1334_v22 = vrot.slane (!%p1443_p5), %v1333_v23, 4 }
 0x63d   : > { %v1335_v24 = vadd.f32 (!%p1443_p5), %v1334_v22, %v1333_v23 }
 0x63f   : > { %v1336_v5 = vrot.slane (!%p1443_p5), %v1335_v24, 2 }
 0x641   : > { %v1337_v6 = vadd.f32 (!%p1443_p5), %v1336_v5, %v1335_v24 }
 0x643   : > { %v1338_v26 = vrot.slane (!%p1443_p5), %v1337_v6, 1 }
 0x645   : > { %v1339_v32 = vadd.f32 (!%p1443_p5), %v1338_v26, %v1337_v6 }
 0x647   : > { %v1340_v30 = vsub.f32 (!%p1443_p5), 0.0, %v1339_v32 }
 0x649   : > { %v1342_v8 = vmul.f32 (!%p1443_p5), 0.125, %v1340_v30 }
 0x64a   : > { %s1892_s23 = spop %1891  ;;  %1316 = sbr.rel (%p1443_p5) target bundleno = 1631 (0x65f), region = 48 }
 0x64b   : > { %s1299_s25 = smul.f32 0.5, %s1892_s23 }
 0x64d   : > { %v1300_v58 = vstv %s1299_s25 }
 0x64e   : > { %v1301_v62 = vadd.f32 %v1300_v58, %v1281_v57 }
 0x650   : > { %1303 = vst.msk [vmem:[#allocation4] sm:$0x1] %vm1302_vm4, %v1301_v62 }
 0x657   : > { %v1343_v25 = vld [vmem:[#allocation4] sm:$0x1] }
 0x658   : > { %v1344_v27 = vmul.f32 0.0001, %v1343_v25 }
 0x65a   : > { %v1345_v28 = vmul.f32 0.125, %v1344_v27 }
 0x65c   : > { %v1346_v29 = vadd.f32 %v1345_v28, %v1342_v8 }
 0x65e   : > { %1347 = vst.msk [vmem:[#allocation5] sm:$0x1] %vm1302_vm4, %v1346_v29 }
 0x65f PF: > { %p1897_p6 = scmp.eq.s32.totalorder %s2031_s19, 1  ;;  %s1994_s26 = smov [#allocation5]  }
 0x660   : > { %s1355_s28 = sshll.u32 %s1994_s26, 4  ;;  %s1356_s28 = int_to_ptr.vmem [resolvable:$true] %s1355_s28 }
 0x661   : > { %s1950_s29 = scalar_lea.vmem %s1356_s28, 16  ;;  %s1956_s30 = scalar_lea.vmem %s1356_s28, 32 }
 0x662   : > { %p1951_p7 = scmp.ne.s32.totalorder %s1356_s28, %s1950_s29  ;;  %p1957_p10 = scmp.lt.s32.totalorder %s1356_s28, %s1356_s28 }
 0x663   : > { %p1958_p11 = scmp.lt.s32.totalorder %s1956_s30, %s1950_s29 }
 0x664   : > { %p1952_p8 = pnand %p1951_p7, %p1897_p6 }
 0x665   : > { %p1959_p12 = por %p1958_p11, %p1957_p10 }
 0x666   : > { %p1953_p9 = pneg %p1952_p8 }
 0x668   : > { %p1960_p13 = pnand %p1959_p12, %p1953_p9 }
 0x66a   : > { %1963 = shalt.err (!%p1960_p13)
}
 0x66b   : > { %s1964_s8 = scalar_lea.hbm %s2547_s5, 16 }
 0x66c   : > { %p1965_p0 = scmp.ne.s32.totalorder %s2547_s5, %s1964_s8  ;;  %p1970_p3 = scmp.lt.u32.totalorder %s1964_s8, %s2547_s5 }
 0x66e   : > { %p1966_p1 = pnand %p1965_p0, %p1897_p6 }
 0x670   : > { %p1967_p2 = pneg %p1966_p1 }
 0x672   : > { %p1972_p4 = pnand %p1970_p3, %p1967_p2 }
 0x674   : > { %1975 = shalt.err (!%p1972_p4)
}
 0x675   : > { %1894 = dma.vmem_to_hbm [thread:$0]  (%p1897_p6), %s1356_s28, 16, %s2547_s5, [#allocation6]  }
 0x676   : > { %1981 = dma.done.wait (%p1897_p6), [#allocation6], 16  }
 0x677   : > { %1983 = vsyncadd (%p1897_p6), [#allocation6], 4294967280 }
 0x678 PF: > { %s16_s18 = sadd.s32 1, %s1986_s18  }
 0x679   : > { %p13_p5 = scmp.ge.s32.totalorder %s16_s18, 4  }
 0x67b   :  { %15 = sbr.rel (!%p13_p5) target bundleno = 1 (0x1), region = 78 }
 0x682   :  { %1368 = vsyncpa [#allocation6], 1 }
 0x683   :  { %1370 = vsyncpa [#allocation6 + $0x1], 1 }

</bundles_post_ra>
